<compile_context>
chip_gen: v7x
topology: tpu7x:2x2x1
jax: 0.10.0
libtpu: 0.0.40
codegen_flags: <defaults>
</compile_context>

<pallas_src>
import functools
import math

import jax
import jax.numpy as jnp
from jax import lax
from jax.experimental import pallas as pl
from jax.experimental.pallas import tpu as pltpu

LN_EPS = 1e-5   # nn.LayerNorm default


def _layernorm(x, w, b):
    # x: (M, E) f32, w/b: (1, E) f32
    mu = jnp.mean(x, axis=-1, keepdims=True)
    xc = x - mu
    var = jnp.mean(xc * xc, axis=-1, keepdims=True)
    return xc * lax.rsqrt(var + LN_EPS) * w + b


def _gelu_exact(x):
    # PyTorch activation='gelu' default is the exact (erf) GELU.
    return 0.5 * x * (1.0 + lax.erf(x * 0.7071067811865476))


# --------------------------------------------------------------------------- #
# Kernel 1: fused encoder stack (all layers) + final LayerNorm.               #
# --------------------------------------------------------------------------- #
def _encoder_kernel(
        x_ref,
        ln1w_ref, ln1b_ref, wqkv_ref, bqkv_ref, wo_ref, bo_ref,
        ln2w_ref, ln2b_ref, w1_ref, b1_ref, w2_ref, b2_ref,
        lnfw_ref, lnfb_ref,
        h_ref,
        x_sc,
        *, n_heads, seq_len, n_layers):
    """Grid = (batch_blocks, n_layers).  The (Bt*L, E) activation slab stays
    resident in the VMEM scratch across the (sequential) layer axis; the final
    LayerNorm'd activations are written (bf16) on the last layer only."""
    l = pl.program_id(1)
    M, E = x_sc.shape
    L = seq_len
    Bt = M // L
    H = n_heads
    d = E // H
    bf16 = jnp.bfloat16
    f32 = jnp.float32

    # Load activations into the resident scratch at the first layer.
    @pl.when(l == 0)
    def _():
        x_sc[...] = x_ref[...]

    x = x_sc[...]                                            # (M, E) f32

    # ---------------- self-attention block: x = x + SA(LN1(x)) ----------------
    h1 = _layernorm(x, ln1w_ref[0], ln1b_ref[0])             # (M, E) f32
    # Fused QKV projection: ONE lane-dense MXU matmul; 1/sqrt(d_head) is folded
    # into the Q columns of wqkv and the Q third of bqkv at parameter prep.
    qkv = jnp.dot(h1.astype(bf16), wqkv_ref[0],
                  preferred_element_type=f32) + bqkv_ref[0]  # (M, 3E)

    # Causal mask built in-kernel (no (L, L) DMA), folded into the score select.
    row = lax.broadcasted_iota(jnp.int32, (L, L), 0)
    col = lax.broadcasted_iota(jnp.int32, (L, L), 1)
    causal = (col <= row)[None, :, :]                        # (1, L, L) bool

    # Attention core is inherently head-blocked: carve heads out of the fused
    # QKV result with static lane slices + leading-dim reshapes only, then run
    # one Bt-batched MXU matmul per head (static unroll over H).
    o_parts = []
    for h in range(H):
        qh = qkv[:, h * d:(h + 1) * d].reshape(Bt, L, d)
        kh = qkv[:, E + h * d:E + (h + 1) * d].reshape(Bt, L, d)
        vh = qkv[:, 2 * E + h * d:2 * E + (h + 1) * d].reshape(Bt, L, d)
        s = jnp.einsum('bld,bmd->blm', qh.astype(bf16), kh.astype(bf16),
                       preferred_element_type=f32)           # (Bt, L, L)
        s = jnp.where(causal, s, -1e9)
        m = jnp.max(s, axis=-1, keepdims=True)
        p = jnp.exp(s - m)
        p = p * pl.reciprocal(jnp.sum(p, axis=-1, keepdims=True), approx=True)
        oh = jnp.einsum('blm,bmd->bld', p.astype(bf16), vh.astype(bf16),
                        preferred_element_type=f32)          # (Bt, L, d)
        o_parts.append(oh.reshape(M, d))
    o_cat = jnp.concatenate(o_parts, axis=-1)                # (M, E) head-major

    # Single (M,E)x(E,E) output projection (contraction K = E fills the MXU).
    x = x + jnp.dot(o_cat.astype(bf16), wo_ref[0],
                    preferred_element_type=f32) + bo_ref[0]

    # ---------------- feed-forward block: x = x + W2 gelu(W1 LN2(x)) ----------
    h2 = _layernorm(x, ln2w_ref[0], ln2b_ref[0])
    f = jnp.dot(h2.astype(bf16), w1_ref[0],
                preferred_element_type=f32) + b1_ref[0]
    f = _gelu_exact(f)
    f = jnp.dot(f.astype(bf16), w2_ref[0],
                preferred_element_type=f32) + b2_ref[0]
    x = x + f
    x_sc[...] = x

    # -------------- final LayerNorm, written out on the last layer only -------
    @pl.when(l == n_layers - 1)
    def _():
        hf = _layernorm(x, lnfw_ref[...], lnfb_ref[...])
        h_ref[...] = hf.astype(h_ref.dtype)


# --------------------------------------------------------------------------- #
# Kernel 2: output Linear (vocab-tiled) -> lane-dense (Bt, L, Vp-tile) store.  #
# --------------------------------------------------------------------------- #
def _head_kernel(h_ref, wout_ref, bout_ref, o_ref, *, seq_len):
    M = h_ref.shape[0]
    Bt = M // seq_len
    logits = jnp.dot(h_ref[...], wout_ref[...],
                     preferred_element_type=jnp.float32) + bout_ref[...]
    # One contiguous lane/sublane-dense store (no strided per-row writes).
    o_ref[...] = logits.reshape(Bt, seq_len, logits.shape[-1])


# --------------------------------------------------------------------------- #
# Host-side wrappers.                                                          #
# --------------------------------------------------------------------------- #
def _vmem_limit_bytes():
    # v5e/v6e have 128 MiB physical VMEM -> use most of it; v7x only has 64 MiB.
    kind = ""
    try:
        kind = jax.devices()[0].device_kind.lower()
    except Exception:
        pass
    if "v7" in kind or "7x" in kind:
        return 48 * 1024 * 1024
    return 100 * 1024 * 1024


def _pick_batch_block(batch, seq_len, target_rows=512):
    """Largest Bt with Bt*L <= target_rows (MXU row fill vs. VMEM budget),
    preferring >= 2 batch blocks (both v7x TensorCores busy) when that still
    leaves a reasonably full row slab."""
    cands = [bt for bt in range(1, batch + 1)
             if batch % bt == 0 and (bt == batch or (bt * seq_len) % 16 == 0)]
    fitting = [bt for bt in cands if bt * seq_len <= target_rows] or [min(cands)]
    two_core = [bt for bt in fitting if batch // bt >= 2 and bt * seq_len >= 256]
    return max(two_core) if two_core else max(fitting)


def _pick_vocab_tile(vp, max_tile=2048):
    tv = min(vp, max_tile)
    while vp % tv:
        tv -= 128
    return tv


def run_encoder(x_flat, params, n_heads, batch, seq_len, batch_block):
    """x_flat: (B*L, E) f32 batch-major rows.  Returns (B*L, E) bf16 (post final LN)."""
    _, E = x_flat.shape
    L, B, Bt = seq_len, batch, batch_block
    NL = params["ln1_w"].shape[0]
    F = params["w1"].shape[-1]

    def layer_spec(shape):
        # Per-layer stacked param (NL, *shape): one layer block per grid step.
        return pl.BlockSpec((1,) + shape, lambda bb, l: (l,) + (0,) * len(shape))

    def const_spec(shape):
        return pl.BlockSpec(shape, lambda bb, l: (0,) * len(shape))

    kern = functools.partial(_encoder_kernel,
                             n_heads=n_heads, seq_len=L, n_layers=NL)

    in_specs = [
        pl.BlockSpec((Bt * L, E), lambda bb, l: (bb, 0)),       # activations
        layer_spec((1, E)), layer_spec((1, E)),                 # ln1 w, b
        layer_spec((E, 3 * E)), layer_spec((1, 3 * E)),         # fused qkv w, b
        layer_spec((E, E)), layer_spec((1, E)),                 # out-proj w, b
        layer_spec((1, E)), layer_spec((1, E)),                 # ln2 w, b
        layer_spec((E, F)), layer_spec((1, F)),                 # ffn linear1
        layer_spec((F, E)), layer_spec((1, E)),                 # ffn linear2
        const_spec((1, E)), const_spec((1, E)),                 # final LN
    ]

    return pl.pallas_call(
        kern,
        out_shape=jax.ShapeDtypeStruct((B * L, E), jnp.bfloat16),
        grid=(B // Bt, NL),
        in_specs=in_specs,
        out_specs=pl.BlockSpec((Bt * L, E), lambda bb, l: (bb, 0)),
        scratch_shapes=[pltpu.VMEM((Bt * L, E), jnp.float32)],
        compiler_params=pltpu.CompilerParams(
            dimension_semantics=("parallel", "arbitrary"),
            vmem_limit_bytes=_vmem_limit_bytes()),
    )(x_flat,
      params["ln1_w"], params["ln1_b"], params["wqkv"], params["bqkv"],
      params["wo"], params["bo"], params["ln2_w"], params["ln2_b"],
      params["w1"], params["b1"], params["w2"], params["b2"],
      params["lnf_w"], params["lnf_b"])


def run_head(h_flat, wout, bout, batch, seq_len, batch_block):
    """h_flat: (B*L, E) bf16 post-final-LN activations.  Returns (B, L, Vp) f32."""
    _, E = h_flat.shape
    L, B, Bt = seq_len, batch, batch_block
    Vp = wout.shape[-1]
    TV = _pick_vocab_tile(Vp)
    kern = functools.partial(_head_kernel, seq_len=L)
    return pl.pallas_call(
        kern,
        out_shape=jax.ShapeDtypeStruct((B, L, Vp), jnp.float32),
        grid=(B // Bt, Vp // TV),
        in_specs=[
            pl.BlockSpec((Bt * L, E), lambda bb, v: (bb, 0)),
            pl.BlockSpec((E, TV), lambda bb, v: (0, v)),
            pl.BlockSpec((1, TV), lambda bb, v: (0, v)),
        ],
        out_specs=pl.BlockSpec((Bt, L, TV), lambda bb, v: (bb, 0, v)),
        compiler_params=pltpu.CompilerParams(
            dimension_semantics=("parallel", "arbitrary"),
            vmem_limit_bytes=_vmem_limit_bytes()),
    )(h_flat, wout, bout)


def trans_policy_forward(tokens, params, n_heads, batch_block=None):
    """tokens: (L, B) int32.  Returns logits (L, B, V) — the Categorical params."""
    L, B = tokens.shape
    emb = params["embedding"]          # (V, E) f32
    pos = params["pos_embedding"]      # (max_len, E) f32
    V = emb.shape[0]
    Bt = _pick_batch_block(B, L) if batch_block is None else batch_block
    assert B % Bt == 0

    # Glue: embedding gather + positional add in batch-major order (XLA), so the
    # kernel's activation rows are (b, l)-contiguous with no transpose.
    x = emb[tokens.T] + pos[:L][None, :, :]           # (B, L, E) f32
    x = x.reshape(B * L, -1)

    hf = run_encoder(x, params, n_heads, batch=B, seq_len=L, batch_block=Bt)
    logits_blv = run_head(hf, params["wout"], params["bout"],
                          batch=B, seq_len=L, batch_block=Bt)     # (B, L, Vp)
    # Permute back to PyTorch's (L, B, V) layout and drop the zero vocab padding.
    return jnp.transpose(logits_blv[..., :V], (1, 0, 2))


def init_params(key, vocab_size, max_len, n_embed, n_layers, n_heads, pad_idx=0):
    E, V, F, H = n_embed, vocab_size, 4 * n_embed, n_heads
    assert E % H == 0
    d = E // H
    Vp = ((V + 127) // 128) * 128                     # lane-dense padded vocab
    scale = 1.0 / math.sqrt(d)
    std = 0.02
    ks = jax.random.split(key, 3 + n_layers)

    emb = std * jax.random.normal(ks[0], (V, E), jnp.float32)
    emb = emb.at[pad_idx].set(0.0)                    # padding_idx row is zero
    pos = std * jax.random.normal(ks[1], (max_len, E), jnp.float32)

    layers = []
    for i in range(n_layers):
        k0, k1, k2, k3, k4, k5 = jax.random.split(ks[3 + i], 6)
        # Dense weights stored transposed (y = x @ W), MXU operands in bf16.
        wq = std * jax.random.normal(k0, (E, E), jnp.float32)
        wk = std * jax.random.normal(k1, (E, E), jnp.float32)
        wv = std * jax.random.normal(k2, (E, E), jnp.float32)
        wo = std * jax.random.normal(k3, (E, E), jnp.float32)
        w1 = std * jax.random.normal(k4, (E, F), jnp.float32)
        w2 = std * jax.random.normal(k5, (F, E), jnp.float32)
        bq = jnp.zeros((1, E), jnp.float32)           # torch in_proj bias thirds
        bk = jnp.zeros((1, E), jnp.float32)
        bv = jnp.zeros((1, E), jnp.float32)
        layers.append(dict(
            ln1_w=jnp.ones((1, E), jnp.float32),
            ln1_b=jnp.zeros((1, E), jnp.float32),
            # Fused (E, 3E) QKV weight, columns [q | k | v]; head h uses columns
            # h*d:(h+1)*d of each section.  1/sqrt(d_head) folded into BOTH the
            # Q weight columns and the Q bias (bias is zero here, but scaled so
            # a real checkpoint load stays correct).
            wqkv=jnp.concatenate([wq * scale, wk, wv], axis=1).astype(jnp.bfloat16),
            bqkv=jnp.concatenate([bq * scale, bk, bv], axis=1),
            wo=wo.astype(jnp.bfloat16),               # (E, E) = out_proj.weight^T
            bo=jnp.zeros((1, E), jnp.float32),
            ln2_w=jnp.ones((1, E), jnp.float32),
            ln2_b=jnp.zeros((1, E), jnp.float32),
            w1=w1.astype(jnp.bfloat16), b1=jnp.zeros((1, F), jnp.float32),
            w2=w2.astype(jnp.bfloat16), b2=jnp.zeros((1, E), jnp.float32),
        ))
    stacked = {k: jnp.stack([lp[k] for lp in layers], axis=0) for k in layers[0]}

    wout = std * jax.random.normal(ks[2], (E, V), jnp.float32)
    wout_p = jnp.zeros((E, Vp), jnp.float32).at[:, :V].set(wout).astype(jnp.bfloat16)
    bout_p = jnp.zeros((1, Vp), jnp.float32)

    return dict(
        embedding=emb,
        pos_embedding=pos,
        **stacked,
        lnf_w=jnp.ones((1, E), jnp.float32),
        lnf_b=jnp.zeros((1, E), jnp.float32),
        wout=wout_p,
        bout=bout_p,
    )


if __name__ == "__main__":
    # Small, module-consistent shapes.
    VOCAB = 16       # len(vocab); pad=0, bos=1, eos=2
    MAX_LEN = 16
    L, B = 8, 2
    N_HEADS = 2
    N_EMBED = 32
    N_LAYERS = 2

    key = jax.random.PRNGKey(0)
    k_tok, k_par = jax.random.split(key)
    tokens = jax.random.randint(k_tok, (L, B), 0, VOCAB, dtype=jnp.int32)
    params = init_params(k_par, VOCAB, MAX_LEN, N_EMBED, N_LAYERS, N_HEADS)

    logits = trans_policy_forward(tokens, params, N_HEADS)
    logits = jax.block_until_ready(logits)

    assert logits.shape == (L, B, VOCAB)
    assert bool(jnp.all(jnp.isfinite(logits)))
    print("KERNEL_OK")
</pallas_src>

<mosaic_0001>
module attributes {stable_mosaic.version = 11 : i64} {
  func.func @_encoder_kernel(%arg0: i32, %arg1: i32, %arg2: memref<16x32xf32, #tpu.memory_space<vmem>>, %arg3: memref<1x1x32xf32, #tpu.memory_space<vmem>>, %arg4: memref<1x1x32xf32, #tpu.memory_space<vmem>>, %arg5: memref<1x32x96xbf16, #tpu.memory_space<vmem>>, %arg6: memref<1x1x96xf32, #tpu.memory_space<vmem>>, %arg7: memref<1x32x32xbf16, #tpu.memory_space<vmem>>, %arg8: memref<1x1x32xf32, #tpu.memory_space<vmem>>, %arg9: memref<1x1x32xf32, #tpu.memory_space<vmem>>, %arg10: memref<1x1x32xf32, #tpu.memory_space<vmem>>, %arg11: memref<1x32x128xbf16, #tpu.memory_space<vmem>>, %arg12: memref<1x1x128xf32, #tpu.memory_space<vmem>>, %arg13: memref<1x128x32xbf16, #tpu.memory_space<vmem>>, %arg14: memref<1x1x32xf32, #tpu.memory_space<vmem>>, %arg15: memref<1x32xf32, #tpu.memory_space<vmem>>, %arg16: memref<1x32xf32, #tpu.memory_space<vmem>>, %arg17: memref<16x32xbf16, #tpu.memory_space<vmem>>, %arg18: memref<16x32xf32, #tpu.memory_space<vmem>>) attributes {dimension_semantics = [#tpu.dimension_semantics<parallel>, #tpu.dimension_semantics<arbitrary>], iteration_bounds = array<i64: 1, 2>, scalar_prefetch = 0 : i64, scratch_operands = 1 : i64, tpu.core_type = #tpu.core_type<tc>, window_params = [{transform_indices = @transform_0, window_bounds = array<i64: 16, 32>}, {transform_indices = @transform_1, window_bounds = array<i64: 1, 1, 32>}, {transform_indices = @transform_2, window_bounds = array<i64: 1, 1, 32>}, {transform_indices = @transform_3, window_bounds = array<i64: 1, 32, 96>}, {transform_indices = @transform_4, window_bounds = array<i64: 1, 1, 96>}, {transform_indices = @transform_5, window_bounds = array<i64: 1, 32, 32>}, {transform_indices = @transform_6, window_bounds = array<i64: 1, 1, 32>}, {transform_indices = @transform_7, window_bounds = array<i64: 1, 1, 32>}, {transform_indices = @transform_8, window_bounds = array<i64: 1, 1, 32>}, {transform_indices = @transform_9, window_bounds = array<i64: 1, 32, 128>}, {transform_indices = @transform_10, window_bounds = array<i64: 1, 1, 128>}, {transform_indices = @transform_11, window_bounds = array<i64: 1, 128, 32>}, {transform_indices = @transform_12, window_bounds = array<i64: 1, 1, 32>}, {pipeline_mode = #tpu.pipeline_mode<synchronous>, transform_indices = @transform_13, window_bounds = array<i64: 1, 32>}, {pipeline_mode = #tpu.pipeline_mode<synchronous>, transform_indices = @transform_14, window_bounds = array<i64: 1, 32>}, {transform_indices = @transform_15, window_bounds = array<i64: 16, 32>}]} {
    %c0_i32 = arith.constant 0 : i32
    %0 = arith.cmpi eq, %arg1, %c0_i32 : i32
    %1 = arith.extui %0 : i1 to i32
    %c0_i32_0 = arith.constant 0 : i32
    %2 = arith.cmpi ne, %1, %c0_i32_0 : i32
    scf.if %2 {
      %c0_67 = arith.constant 0 : index
      %c0_68 = arith.constant 0 : index
      %157 = vector.load %arg2[%c0_67, %c0_68] : memref<16x32xf32, #tpu.memory_space<vmem>>, vector<16x32xf32>
      %c0_69 = arith.constant 0 : index
      %c0_70 = arith.constant 0 : index
      %158 = vector.load %arg18[%c0_69, %c0_70] : memref<16x32xf32, #tpu.memory_space<vmem>>, vector<16x32xf32>
      tpu.vector_store %arg18[%c0_69, %c0_70], %157 {strides = array<i32>} : memref<16x32xf32, #tpu.memory_space<vmem>>, vector<16x32xf32>,
    } else {
    }
    %c0 = arith.constant 0 : index
    %c0_1 = arith.constant 0 : index
    %3 = vector.load %arg18[%c0, %c0_1] : memref<16x32xf32, #tpu.memory_space<vmem>>, vector<16x32xf32>
    %c0_2 = arith.constant 0 : index
    %c0_3 = arith.constant 0 : index
    %c0_4 = arith.constant 0 : index
    %4 = vector.load %arg3[%c0_2, %c0_3, %c0_4] : memref<1x1x32xf32, #tpu.memory_space<vmem>>, vector<1x1x32xf32>
    %5 = vector.shape_cast %4 : vector<1x1x32xf32> to vector<1x32xf32>
    %c0_5 = arith.constant 0 : index
    %c0_6 = arith.constant 0 : index
    %c0_7 = arith.constant 0 : index
    %6 = vector.load %arg4[%c0_5, %c0_6, %c0_7] : memref<1x1x32xf32, #tpu.memory_space<vmem>>, vector<1x1x32xf32>
    %7 = vector.shape_cast %6 : vector<1x1x32xf32> to vector<1x32xf32>
    %cst = arith.constant dense<0.000000e+00> : vector<16xf32>
    %8 = vector.multi_reduction <add>, %3, %cst [1] : vector<16x32xf32> to vector<16xf32>
    %9 = vector.shape_cast %8 : vector<16xf32> to vector<16x1xf32>
    %cst_8 = arith.constant 3.200000e+01 : f32
    %10 = vector.broadcast %cst_8 : f32 to vector<16x1xf32>
    %11 = arith.divf %9, %10 : vector<16x1xf32>
    %12 = vector.broadcast %11 : vector<16x1xf32> to vector<16x32xf32>
    %13 = arith.subf %3, %12 : vector<16x32xf32>
    %14 = arith.mulf %13, %13 : vector<16x32xf32>
    %cst_9 = arith.constant dense<0.000000e+00> : vector<16xf32>
    %15 = vector.multi_reduction <add>, %14, %cst_9 [1] : vector<16x32xf32> to vector<16xf32>
    %16 = vector.shape_cast %15 : vector<16xf32> to vector<16x1xf32>
    %cst_10 = arith.constant 3.200000e+01 : f32
    %17 = vector.broadcast %cst_10 : f32 to vector<16x1xf32>
    %18 = arith.divf %16, %17 : vector<16x1xf32>
    %cst_11 = arith.constant 9.99999974E-6 : f32
    %19 = vector.broadcast %cst_11 : f32 to vector<16x1xf32>
    %20 = arith.addf %18, %19 : vector<16x1xf32>
    %21 = math.rsqrt %20 : vector<16x1xf32>
    %22 = vector.broadcast %21 : vector<16x1xf32> to vector<16x32xf32>
    %23 = arith.mulf %13, %22 : vector<16x32xf32>
    %24 = vector.broadcast %5 : vector<1x32xf32> to vector<16x32xf32>
    %25 = arith.mulf %23, %24 : vector<16x32xf32>
    %26 = vector.broadcast %7 : vector<1x32xf32> to vector<16x32xf32>
    %27 = arith.addf %25, %26 : vector<16x32xf32>
    %28 = arith.truncf %27 : vector<16x32xf32> to vector<16x32xbf16>
    %c0_12 = arith.constant 0 : index
    %c0_13 = arith.constant 0 : index
    %c0_14 = arith.constant 0 : index
    %29 = vector.load %arg5[%c0_12, %c0_13, %c0_14] : memref<1x32x96xbf16, #tpu.memory_space<vmem>>, vector<1x32x96xbf16>
    %30 = vector.shape_cast %29 : vector<1x32x96xbf16> to vector<32x96xbf16>
    %cst_15 = arith.constant dense<0.000000e+00> : vector<16x96xf32>
    %31 = tpu.matmul %28, %30, %cst_15 {dimension_numbers = #tpu.dot_dimension_numbers<[1], [0], [0], [1], [0, 0, 1, 1], [], []>} : vector<16x32xbf16>, vector<32x96xbf16>, vector<16x96xf32> -> vector<16x96xf32>
    %c0_16 = arith.constant 0 : index
    %c0_17 = arith.constant 0 : index
    %c0_18 = arith.constant 0 : index
    %32 = vector.load %arg6[%c0_16, %c0_17, %c0_18] : memref<1x1x96xf32, #tpu.memory_space<vmem>>, vector<1x1x96xf32>
    %33 = vector.shape_cast %32 : vector<1x1x96xf32> to vector<1x96xf32>
    %34 = vector.broadcast %33 : vector<1x96xf32> to vector<16x96xf32>
    %35 = arith.addf %31, %34 : vector<16x96xf32>
    %36 = tpu.iota {dimensions = array<i32: 0>} : vector<8x8xi32>
    %37 = tpu.iota {dimensions = array<i32: 1>} : vector<8x8xi32>
    %38 = arith.cmpi sle, %37, %36 : vector<8x8xi32>
    %39 = vector.shape_cast %38 : vector<8x8xi1> to vector<1x8x8xi1>
    %40 = vector.extract_strided_slice %35 {offsets = [0, 0], sizes = [16, 16], strides = [1, 1]} : vector<16x96xf32> to vector<16x16xf32>
    %41 = vector.shape_cast %40 : vector<16x16xf32> to vector<2x8x16xf32>
    %42 = vector.extract_strided_slice %35 {offsets = [0, 32], sizes = [16, 16], strides = [1, 1]} : vector<16x96xf32> to vector<16x16xf32>
    %43 = vector.shape_cast %42 : vector<16x16xf32> to vector<2x8x16xf32>
    %44 = vector.extract_strided_slice %35 {offsets = [0, 64], sizes = [16, 16], strides = [1, 1]} : vector<16x96xf32> to vector<16x16xf32>
    %45 = vector.shape_cast %44 : vector<16x16xf32> to vector<2x8x16xf32>
    %46 = arith.truncf %41 : vector<2x8x16xf32> to vector<2x8x16xbf16>
    %47 = arith.truncf %43 : vector<2x8x16xf32> to vector<2x8x16xbf16>
    "tpu.trace_start"() <{level = 10 : i32, message = "bld,bmd->blm"}> : () -> ()
    %cst_19 = arith.constant dense<0.000000e+00> : vector<2x8x8xf32>
    %48 = tpu.matmul %46, %47, %cst_19 {dimension_numbers = #tpu.dot_dimension_numbers<[2], [2], [1], [1], [0, 0, 0, 1, 1, 1], [0], [0]>} : vector<2x8x16xbf16>, vector<2x8x16xbf16>, vector<2x8x8xf32> -> vector<2x8x8xf32>
    %cst_20 = arith.constant -1.000000e+09 : f32
    "tpu.trace_stop"() : () -> ()
    %49 = vector.shape_cast %39 : vector<1x8x8xi1> to vector<1x8x8xi1>
    %50 = vector.broadcast %49 : vector<1x8x8xi1> to vector<2x8x8xi1>
    %51 = vector.broadcast %cst_20 : f32 to vector<2x8x8xf32>
    %52 = arith.select %50, %48, %51 : vector<2x8x8xi1>, vector<2x8x8xf32>
    %cst_21 = arith.constant dense<0xFF800000> : vector<2x8xf32>
    %53 = vector.multi_reduction <maximumf>, %52, %cst_21 [2] : vector<2x8x8xf32> to vector<2x8xf32>
    %54 = vector.shape_cast %53 : vector<2x8xf32> to vector<2x8x1xf32>
    %55 = vector.broadcast %54 : vector<2x8x1xf32> to vector<2x8x8xf32>
    %56 = arith.subf %52, %55 : vector<2x8x8xf32>
    %57 = math.exp %56 : vector<2x8x8xf32>
    %cst_22 = arith.constant dense<0.000000e+00> : vector<2x8xf32>
    %58 = vector.multi_reduction <add>, %57, %cst_22 [2] : vector<2x8x8xf32> to vector<2x8xf32>
    %59 = vector.shape_cast %58 : vector<2x8xf32> to vector<2x8x1xf32>
    %60 = tpu.reciprocal %59 {approx = true} : vector<2x8x1xf32> -> vector<2x8x1xf32>
    %61 = vector.broadcast %60 : vector<2x8x1xf32> to vector<2x8x8xf32>
    %62 = arith.mulf %57, %61 : vector<2x8x8xf32>
    %63 = arith.truncf %62 : vector<2x8x8xf32> to vector<2x8x8xbf16>
    %64 = arith.truncf %45 : vector<2x8x16xf32> to vector<2x8x16xbf16>
    "tpu.trace_start"() <{level = 10 : i32, message = "blm,bmd->bld"}> : () -> ()
    %cst_23 = arith.constant dense<0.000000e+00> : vector<2x8x16xf32>
    %65 = tpu.matmul %63, %64, %cst_23 {dimension_numbers = #tpu.dot_dimension_numbers<[2], [1], [1], [2], [0, 0, 0, 1, 1, 2], [0], [0]>} : vector<2x8x8xbf16>, vector<2x8x16xbf16>, vector<2x8x16xf32> -> vector<2x8x16xf32>
    "tpu.trace_stop"() : () -> ()
    %66 = vector.shape_cast %65 : vector<2x8x16xf32> to vector<16x16xf32>
    %67 = vector.extract_strided_slice %35 {offsets = [0, 16], sizes = [16, 16], strides = [1, 1]} : vector<16x96xf32> to vector<16x16xf32>
    %68 = vector.shape_cast %67 : vector<16x16xf32> to vector<2x8x16xf32>
    %69 = vector.extract_strided_slice %35 {offsets = [0, 48], sizes = [16, 16], strides = [1, 1]} : vector<16x96xf32> to vector<16x16xf32>
    %70 = vector.shape_cast %69 : vector<16x16xf32> to vector<2x8x16xf32>
    %71 = vector.extract_strided_slice %35 {offsets = [0, 80], sizes = [16, 16], strides = [1, 1]} : vector<16x96xf32> to vector<16x16xf32>
    %72 = vector.shape_cast %71 : vector<16x16xf32> to vector<2x8x16xf32>
    %73 = arith.truncf %68 : vector<2x8x16xf32> to vector<2x8x16xbf16>
    %74 = arith.truncf %70 : vector<2x8x16xf32> to vector<2x8x16xbf16>
    "tpu.trace_start"() <{level = 10 : i32, message = "bld,bmd->blm"}> : () -> ()
    %cst_24 = arith.constant dense<0.000000e+00> : vector<2x8x8xf32>
    %75 = tpu.matmul %73, %74, %cst_24 {dimension_numbers = #tpu.dot_dimension_numbers<[2], [2], [1], [1], [0, 0, 0, 1, 1, 1], [0], [0]>} : vector<2x8x16xbf16>, vector<2x8x16xbf16>, vector<2x8x8xf32> -> vector<2x8x8xf32>
    %cst_25 = arith.constant -1.000000e+09 : f32
    "tpu.trace_stop"() : () -> ()
    %76 = vector.shape_cast %39 : vector<1x8x8xi1> to vector<1x8x8xi1>
    %77 = vector.broadcast %76 : vector<1x8x8xi1> to vector<2x8x8xi1>
    %78 = vector.broadcast %cst_25 : f32 to vector<2x8x8xf32>
    %79 = arith.select %77, %75, %78 : vector<2x8x8xi1>, vector<2x8x8xf32>
    %cst_26 = arith.constant dense<0xFF800000> : vector<2x8xf32>
    %80 = vector.multi_reduction <maximumf>, %79, %cst_26 [2] : vector<2x8x8xf32> to vector<2x8xf32>
    %81 = vector.shape_cast %80 : vector<2x8xf32> to vector<2x8x1xf32>
    %82 = vector.broadcast %81 : vector<2x8x1xf32> to vector<2x8x8xf32>
    %83 = arith.subf %79, %82 : vector<2x8x8xf32>
    %84 = math.exp %83 : vector<2x8x8xf32>
    %cst_27 = arith.constant dense<0.000000e+00> : vector<2x8xf32>
    %85 = vector.multi_reduction <add>, %84, %cst_27 [2] : vector<2x8x8xf32> to vector<2x8xf32>
    %86 = vector.shape_cast %85 : vector<2x8xf32> to vector<2x8x1xf32>
    %87 = tpu.reciprocal %86 {approx = true} : vector<2x8x1xf32> -> vector<2x8x1xf32>
    %88 = vector.broadcast %87 : vector<2x8x1xf32> to vector<2x8x8xf32>
    %89 = arith.mulf %84, %88 : vector<2x8x8xf32>
    %90 = arith.truncf %89 : vector<2x8x8xf32> to vector<2x8x8xbf16>
    %91 = arith.truncf %72 : vector<2x8x16xf32> to vector<2x8x16xbf16>
    "tpu.trace_start"() <{level = 10 : i32, message = "blm,bmd->bld"}> : () -> ()
    %cst_28 = arith.constant dense<0.000000e+00> : vector<2x8x16xf32>
    %92 = tpu.matmul %90, %91, %cst_28 {dimension_numbers = #tpu.dot_dimension_numbers<[2], [1], [1], [2], [0, 0, 0, 1, 1, 2], [0], [0]>} : vector<2x8x8xbf16>, vector<2x8x16xbf16>, vector<2x8x16xf32> -> vector<2x8x16xf32>
    "tpu.trace_stop"() : () -> ()
    %93 = vector.shape_cast %92 : vector<2x8x16xf32> to vector<16x16xf32>
    %94 = tpu.concatenate %66, %93 in 1 : vector<16x16xf32>, vector<16x16xf32> -> vector<16x32xf32>
    %95 = arith.truncf %94 : vector<16x32xf32> to vector<16x32xbf16>
    %c0_29 = arith.constant 0 : index
    %c0_30 = arith.constant 0 : index
    %c0_31 = arith.constant 0 : index
    %96 = vector.load %arg7[%c0_29, %c0_30, %c0_31] : memref<1x32x32xbf16, #tpu.memory_space<vmem>>, vector<1x32x32xbf16>
    %97 = vector.shape_cast %96 : vector<1x32x32xbf16> to vector<32x32xbf16>
    %cst_32 = arith.constant dense<0.000000e+00> : vector<16x32xf32>
    %98 = tpu.matmul %95, %97, %cst_32 {dimension_numbers = #tpu.dot_dimension_numbers<[1], [0], [0], [1], [0, 0, 1, 1], [], []>} : vector<16x32xbf16>, vector<32x32xbf16>, vector<16x32xf32> -> vector<16x32xf32>
    %99 = arith.addf %3, %98 : vector<16x32xf32>
    %c0_33 = arith.constant 0 : index
    %c0_34 = arith.constant 0 : index
    %c0_35 = arith.constant 0 : index
    %100 = vector.load %arg8[%c0_33, %c0_34, %c0_35] : memref<1x1x32xf32, #tpu.memory_space<vmem>>, vector<1x1x32xf32>
    %101 = vector.shape_cast %100 : vector<1x1x32xf32> to vector<1x32xf32>
    %102 = vector.broadcast %101 : vector<1x32xf32> to vector<16x32xf32>
    %103 = arith.addf %99, %102 : vector<16x32xf32>
    %c0_36 = arith.constant 0 : index
    %c0_37 = arith.constant 0 : index
    %c0_38 = arith.constant 0 : index
    %104 = vector.load %arg9[%c0_36, %c0_37, %c0_38] : memref<1x1x32xf32, #tpu.memory_space<vmem>>, vector<1x1x32xf32>
    %105 = vector.shape_cast %104 : vector<1x1x32xf32> to vector<1x32xf32>
    %c0_39 = arith.constant 0 : index
    %c0_40 = arith.constant 0 : index
    %c0_41 = arith.constant 0 : index
    %106 = vector.load %arg10[%c0_39, %c0_40, %c0_41] : memref<1x1x32xf32, #tpu.memory_space<vmem>>, vector<1x1x32xf32>
    %107 = vector.shape_cast %106 : vector<1x1x32xf32> to vector<1x32xf32>
    %cst_42 = arith.constant dense<0.000000e+00> : vector<16xf32>
    %108 = vector.multi_reduction <add>, %103, %cst_42 [1] : vector<16x32xf32> to vector<16xf32>
    %109 = vector.shape_cast %108 : vector<16xf32> to vector<16x1xf32>
    %cst_43 = arith.constant 3.200000e+01 : f32
    %110 = vector.broadcast %cst_43 : f32 to vector<16x1xf32>
    %111 = arith.divf %109, %110 : vector<16x1xf32>
    %112 = vector.broadcast %111 : vector<16x1xf32> to vector<16x32xf32>
    %113 = arith.subf %103, %112 : vector<16x32xf32>
    %114 = arith.mulf %113, %113 : vector<16x32xf32>
    %cst_44 = arith.constant dense<0.000000e+00> : vector<16xf32>
    %115 = vector.multi_reduction <add>, %114, %cst_44 [1] : vector<16x32xf32> to vector<16xf32>
    %116 = vector.shape_cast %115 : vector<16xf32> to vector<16x1xf32>
    %cst_45 = arith.constant 3.200000e+01 : f32
    %117 = vector.broadcast %cst_45 : f32 to vector<16x1xf32>
    %118 = arith.divf %116, %117 : vector<16x1xf32>
    %cst_46 = arith.constant 9.99999974E-6 : f32
    %119 = vector.broadcast %cst_46 : f32 to vector<16x1xf32>
    %120 = arith.addf %118, %119 : vector<16x1xf32>
    %121 = math.rsqrt %120 : vector<16x1xf32>
    %122 = vector.broadcast %121 : vector<16x1xf32> to vector<16x32xf32>
    %123 = arith.mulf %113, %122 : vector<16x32xf32>
    %124 = vector.broadcast %105 : vector<1x32xf32> to vector<16x32xf32>
    %125 = arith.mulf %123, %124 : vector<16x32xf32>
    %126 = vector.broadcast %107 : vector<1x32xf32> to vector<16x32xf32>
    %127 = arith.addf %125, %126 : vector<16x32xf32>
    %128 = arith.truncf %127 : vector<16x32xf32> to vector<16x32xbf16>
    %c0_47 = arith.constant 0 : index
    %c0_48 = arith.constant 0 : index
    %c0_49 = arith.constant 0 : index
    %129 = vector.load %arg11[%c0_47, %c0_48, %c0_49] : memref<1x32x128xbf16, #tpu.memory_space<vmem>>, vector<1x32x128xbf16>
    %130 = vector.shape_cast %129 : vector<1x32x128xbf16> to vector<32x128xbf16>
    %cst_50 = arith.constant dense<0.000000e+00> : vector<16x128xf32>
    %131 = tpu.matmul %128, %130, %cst_50 {dimension_numbers = #tpu.dot_dimension_numbers<[1], [0], [0], [1], [0, 0, 1, 1], [], []>} : vector<16x32xbf16>, vector<32x128xbf16>, vector<16x128xf32> -> vector<16x128xf32>
    %c0_51 = arith.constant 0 : index
    %c0_52 = arith.constant 0 : index
    %c0_53 = arith.constant 0 : index
    %132 = vector.load %arg12[%c0_51, %c0_52, %c0_53] : memref<1x1x128xf32, #tpu.memory_space<vmem>>, vector<1x1x128xf32>
    %133 = vector.shape_cast %132 : vector<1x1x128xf32> to vector<1x128xf32>
    %134 = vector.broadcast %133 : vector<1x128xf32> to vector<16x128xf32>
    %135 = arith.addf %131, %134 : vector<16x128xf32>
    %cst_54 = arith.constant 5.000000e-01 : f32
    %136 = vector.broadcast %cst_54 : f32 to vector<16x128xf32>
    %137 = arith.mulf %136, %135 : vector<16x128xf32>
    %cst_55 = arith.constant 0.707106769 : f32
    %138 = vector.broadcast %cst_55 : f32 to vector<16x128xf32>
    %139 = arith.mulf %135, %138 : vector<16x128xf32>
    %140 = math.erf %139 : vector<16x128xf32>
    %cst_56 = arith.constant 1.000000e+00 : f32
    %141 = vector.broadcast %cst_56 : f32 to vector<16x128xf32>
    %142 = arith.addf %141, %140 : vector<16x128xf32>
    %143 = arith.mulf %137, %142 : vector<16x128xf32>
    %144 = arith.truncf %143 : vector<16x128xf32> to vector<16x128xbf16>
    %c0_57 = arith.constant 0 : index
    %c0_58 = arith.constant 0 : index
    %c0_59 = arith.constant 0 : index
    %145 = vector.load %arg13[%c0_57, %c0_58, %c0_59] : memref<1x128x32xbf16, #tpu.memory_space<vmem>>, vector<1x128x32xbf16>
    %146 = vector.shape_cast %145 : vector<1x128x32xbf16> to vector<128x32xbf16>
    %cst_60 = arith.constant dense<0.000000e+00> : vector<16x32xf32>
    %147 = tpu.matmul %144, %146, %cst_60 {dimension_numbers = #tpu.dot_dimension_numbers<[1], [0], [0], [1], [0, 0, 1, 1], [], []>} : vector<16x128xbf16>, vector<128x32xbf16>, vector<16x32xf32> -> vector<16x32xf32>
    %c0_61 = arith.constant 0 : index
    %c0_62 = arith.constant 0 : index
    %c0_63 = arith.constant 0 : index
    %148 = vector.load %arg14[%c0_61, %c0_62, %c0_63] : memref<1x1x32xf32, #tpu.memory_space<vmem>>, vector<1x1x32xf32>
    %149 = vector.shape_cast %148 : vector<1x1x32xf32> to vector<1x32xf32>
    %150 = vector.broadcast %149 : vector<1x32xf32> to vector<16x32xf32>
    %151 = arith.addf %147, %150 : vector<16x32xf32>
    %152 = arith.addf %103, %151 : vector<16x32xf32>
    %c0_64 = arith.constant 0 : index
    %c0_65 = arith.constant 0 : index
    %153 = vector.load %arg18[%c0_64, %c0_65] : memref<16x32xf32, #tpu.memory_space<vmem>>, vector<16x32xf32>
    tpu.vector_store %arg18[%c0_64, %c0_65], %152 {strides = array<i32>} : memref<16x32xf32, #tpu.memory_space<vmem>>, vector<16x32xf32>,
    %c1_i32 = arith.constant 1 : i32
    %154 = arith.cmpi eq, %arg1, %c1_i32 : i32
    %155 = arith.extui %154 : i1 to i32
    %c0_i32_66 = arith.constant 0 : i32
    %156 = arith.cmpi ne, %155, %c0_i32_66 : i32
    scf.if %156 {
      %c0_67 = arith.constant 0 : index
      %c0_68 = arith.constant 0 : index
      %157 = vector.load %arg15[%c0_67, %c0_68] : memref<1x32xf32, #tpu.memory_space<vmem>>, vector<1x32xf32>
      %c0_69 = arith.constant 0 : index
      %c0_70 = arith.constant 0 : index
      %158 = vector.load %arg16[%c0_69, %c0_70] : memref<1x32xf32, #tpu.memory_space<vmem>>, vector<1x32xf32>
      %cst_71 = arith.constant dense<0.000000e+00> : vector<16xf32>
      %159 = vector.multi_reduction <add>, %152, %cst_71 [1] : vector<16x32xf32> to vector<16xf32>
      %160 = vector.shape_cast %159 : vector<16xf32> to vector<16x1xf32>
      %cst_72 = arith.constant 3.200000e+01 : f32
      %161 = vector.broadcast %cst_72 : f32 to vector<16x1xf32>
      %162 = arith.divf %160, %161 : vector<16x1xf32>
      %163 = vector.broadcast %162 : vector<16x1xf32> to vector<16x32xf32>
      %164 = arith.subf %152, %163 : vector<16x32xf32>
      %165 = arith.mulf %164, %164 : vector<16x32xf32>
      %cst_73 = arith.constant dense<0.000000e+00> : vector<16xf32>
      %166 = vector.multi_reduction <add>, %165, %cst_73 [1] : vector<16x32xf32> to vector<16xf32>
      %167 = vector.shape_cast %166 : vector<16xf32> to vector<16x1xf32>
      %cst_74 = arith.constant 3.200000e+01 : f32
      %168 = vector.broadcast %cst_74 : f32 to vector<16x1xf32>
      %169 = arith.divf %167, %168 : vector<16x1xf32>
      %cst_75 = arith.constant 9.99999974E-6 : f32
      %170 = vector.broadcast %cst_75 : f32 to vector<16x1xf32>
      %171 = arith.addf %169, %170 : vector<16x1xf32>
      %172 = math.rsqrt %171 : vector<16x1xf32>
      %173 = vector.broadcast %172 : vector<16x1xf32> to vector<16x32xf32>
      %174 = arith.mulf %164, %173 : vector<16x32xf32>
      %175 = vector.broadcast %157 : vector<1x32xf32> to vector<16x32xf32>
      %176 = arith.mulf %174, %175 : vector<16x32xf32>
      %177 = vector.broadcast %158 : vector<1x32xf32> to vector<16x32xf32>
      %178 = arith.addf %176, %177 : vector<16x32xf32>
      %179 = arith.truncf %178 : vector<16x32xf32> to vector<16x32xbf16>
      %c0_76 = arith.constant 0 : index
      %c0_77 = arith.constant 0 : index
      %180 = vector.load %arg17[%c0_76, %c0_77] : memref<16x32xbf16, #tpu.memory_space<vmem>>, vector<16x32xbf16>
      tpu.vector_store %arg17[%c0_76, %c0_77], %179 {strides = array<i32>} : memref<16x32xbf16, #tpu.memory_space<vmem>>, vector<16x32xbf16>,
    } else {
    }
    return
  }
  func.func @transform_0(%arg0: i32, %arg1: i32) -> (i32, i32) {
    %c0_i32 = arith.constant 0 : i32
    %c0_i32_0 = arith.constant 0 : i32
    return %arg0, %c0_i32 : i32, i32
  }
  func.func @transform_1(%arg0: i32, %arg1: i32) -> (i32, i32, i32) {
    %c0_i32 = arith.constant 0 : i32
    %c0_i32_0 = arith.constant 0 : i32
    %c0_i32_1 = arith.constant 0 : i32
    return %arg1, %c0_i32, %c0_i32_0 : i32, i32, i32
  }
  func.func @transform_2(%arg0: i32, %arg1: i32) -> (i32, i32, i32) {
    %c0_i32 = arith.constant 0 : i32
    %c0_i32_0 = arith.constant 0 : i32
    %c0_i32_1 = arith.constant 0 : i32
    return %arg1, %c0_i32, %c0_i32_0 : i32, i32, i32
  }
  func.func @transform_3(%arg0: i32, %arg1: i32) -> (i32, i32, i32) {
    %c0_i32 = arith.constant 0 : i32
    %c0_i32_0 = arith.constant 0 : i32
    %c0_i32_1 = arith.constant 0 : i32
    return %arg1, %c0_i32, %c0_i32_0 : i32, i32, i32
  }
  func.func @transform_4(%arg0: i32, %arg1: i32) -> (i32, i32, i32) {
    %c0_i32 = arith.constant 0 : i32
    %c0_i32_0 = arith.constant 0 : i32
    %c0_i32_1 = arith.constant 0 : i32
    return %arg1, %c0_i32, %c0_i32_0 : i32, i32, i32
  }
  func.func @transform_5(%arg0: i32, %arg1: i32) -> (i32, i32, i32) {
    %c0_i32 = arith.constant 0 : i32
    %c0_i32_0 = arith.constant 0 : i32
    %c0_i32_1 = arith.constant 0 : i32
    return %arg1, %c0_i32, %c0_i32_0 : i32, i32, i32
  }
  func.func @transform_6(%arg0: i32, %arg1: i32) -> (i32, i32, i32) {
    %c0_i32 = arith.constant 0 : i32
    %c0_i32_0 = arith.constant 0 : i32
    %c0_i32_1 = arith.constant 0 : i32
    return %arg1, %c0_i32, %c0_i32_0 : i32, i32, i32
  }
  func.func @transform_7(%arg0: i32, %arg1: i32) -> (i32, i32, i32) {
    %c0_i32 = arith.constant 0 : i32
    %c0_i32_0 = arith.constant 0 : i32
    %c0_i32_1 = arith.constant 0 : i32
    return %arg1, %c0_i32, %c0_i32_0 : i32, i32, i32
  }
  func.func @transform_8(%arg0: i32, %arg1: i32) -> (i32, i32, i32) {
    %c0_i32 = arith.constant 0 : i32
    %c0_i32_0 = arith.constant 0 : i32
    %c0_i32_1 = arith.constant 0 : i32
    return %arg1, %c0_i32, %c0_i32_0 : i32, i32, i32
  }
  func.func @transform_9(%arg0: i32, %arg1: i32) -> (i32, i32, i32) {
    %c0_i32 = arith.constant 0 : i32
    %c0_i32_0 = arith.constant 0 : i32
    %c0_i32_1 = arith.constant 0 : i32
    return %arg1, %c0_i32, %c0_i32_0 : i32, i32, i32
  }
  func.func @transform_10(%arg0: i32, %arg1: i32) -> (i32, i32, i32) {
    %c0_i32 = arith.constant 0 : i32
    %c0_i32_0 = arith.constant 0 : i32
    %c0_i32_1 = arith.constant 0 : i32
    return %arg1, %c0_i32, %c0_i32_0 : i32, i32, i32
  }
  func.func @transform_11(%arg0: i32, %arg1: i32) -> (i32, i32, i32) {
    %c0_i32 = arith.constant 0 : i32
    %c0_i32_0 = arith.constant 0 : i32
    %c0_i32_1 = arith.constant 0 : i32
    return %arg1, %c0_i32, %c0_i32_0 : i32, i32, i32
  }
  func.func @transform_12(%arg0: i32, %arg1: i32) -> (i32, i32, i32) {
    %c0_i32 = arith.constant 0 : i32
    %c0_i32_0 = arith.constant 0 : i32
    %c0_i32_1 = arith.constant 0 : i32
    return %arg1, %c0_i32, %c0_i32_0 : i32, i32, i32
  }
  func.func @transform_13(%arg0: i32, %arg1: i32) -> (i32, i32) {
    %c0_i32 = arith.constant 0 : i32
    %c0_i32_0 = arith.constant 0 : i32
    %c0_i32_1 = arith.constant 0 : i32
    return %c0_i32, %c0_i32_0 : i32, i32
  }
  func.func @transform_14(%arg0: i32, %arg1: i32) -> (i32, i32) {
    %c0_i32 = arith.constant 0 : i32
    %c0_i32_0 = arith.constant 0 : i32
    %c0_i32_1 = arith.constant 0 : i32
    return %c0_i32, %c0_i32_0 : i32, i32
  }
  func.func @transform_15(%arg0: i32, %arg1: i32) -> (i32, i32) {
    %c0_i32 = arith.constant 0 : i32
    %c0_i32_0 = arith.constant 0 : i32
    return %arg0, %c0_i32 : i32, i32
  }
}

</mosaic_0001>

<bundles_post_ra>
// kernel: tpu_custom_call.1
= control target key start
LH: loop header
LB: loop body
LE: loop exit
PB: predicated region body
PF: predicated region fallthrough
CT: control target
= control target key end

     0   :  { %s4117_s0 = inlined_call_operand.hbm [shape: f32[16,32], index: 0, kind: input, shape index: {}]   ;;  %s4118_s1 = inlined_call_operand.hbm [shape: f32[2,1,32], index: 1, kind: input, shape index: {}]   ;;  %s4119_s2 = inlined_call_operand.hbm [shape: f32[2,1,32], index: 2, kind: input, shape index: {}]   ;;  %s4120_s3 = inlined_call_operand.hbm [shape: bf16[2,32,96], index: 3, kind: input, shape index: {}]   ;;  %s4121_s4 = inlined_call_operand.hbm [shape: f32[2,1,96], index: 4, kind: input, shape index: {}]   ;;  %s4122_s5 = inlined_call_operand.hbm [shape: bf16[2,32,32], index: 5, kind: input, shape index: {}]   ;;  %s4123_s6 = inlined_call_operand.hbm [shape: f32[2,1,32], index: 6, kind: input, shape index: {}]   ;;  %s4124_s7 = inlined_call_operand.hbm [shape: f32[2,1,32], index: 7, kind: input, shape index: {}]   ;;  %s4125_s8 = inlined_call_operand.hbm [shape: f32[2,1,32], index: 8, kind: input, shape index: {}]   ;;  %s4126_s9 = inlined_call_operand.hbm [shape: bf16[2,32,128], index: 9, kind: input, shape index: {}]   ;;  %s4127_s10 = inlined_call_operand.hbm [shape: f32[2,1,128], index: 10, kind: input, shape index: {}]   ;;  %s4128_s11 = inlined_call_operand.hbm [shape: bf16[2,128,32], index: 11, kind: input, shape index: {}]   ;;  %s4129_s12 = inlined_call_operand.hbm [shape: f32[2,1,32], index: 12, kind: input, shape index: {}]   ;;  %s4130_s13 = inlined_call_operand.hbm [shape: f32[1,32], index: 13, kind: input, shape index: {}]   ;;  %s4131_s14 = inlined_call_operand.hbm [shape: f32[1,32], index: 14, kind: input, shape index: {}]   ;;  %s4132_s15 = inlined_call_operand.hbm [shape: bf16[16,32], index: 15, kind: output, shape index: {}]  }
   0x1   :  { %4166 = sst [smem:[#allocation46_spill]] %s4118_s1 }
   0x2   :  { %4167 = sst [smem:[#allocation47_spill]] %s4120_s3 }
   0x3   :  { %4168 = sst [smem:[#allocation48_spill]] %s4122_s5 }
   0x4   :  { %4169 = sst [smem:[#allocation49_spill]] %s4124_s7 }
   0x5   :  { %4170 = sst [smem:[#allocation50_spill]] %s4125_s8 }
   0x6   :  { %4171 = sst [smem:[#allocation51_spill]] %s4126_s9 }
   0x7   :  { %4172 = sst [smem:[#allocation52_spill]] %s4127_s10 }
   0x8   :  { %4173 = sst [smem:[#allocation53_spill]] %s4129_s12 }
   0x9   :  { %4174 = sst [smem:[#allocation54_spill]] %s4130_s13 }
   0xa   :  { %4175 = sst [smem:[#allocation55_spill]] %s4132_s15 }
   0xb   :  { %20 = vsyncpa [#allocation4], 0 }
   0xc   :  { %21 = vsyncpa [#allocation7], 0 }
   0xd   :  { %23 = vsyncpa [#allocation7 + $0x1], 0 }
   0xe   :  { %24 = vsyncpa [#allocation10], 0 }
   0xf   :  { %26 = vsyncpa [#allocation10 + $0x1], 0 }
  0x10   :  { %27 = vsyncpa [#allocation13], 0 }
  0x11   :  { %29 = vsyncpa [#allocation13 + $0x1], 0 }
  0x12   :  { %30 = vsyncpa [#allocation16], 0 }
  0x13   :  { %32 = vsyncpa [#allocation16 + $0x1], 0 }
  0x14   :  { %33 = vsyncpa [#allocation19], 0 }
  0x15   :  { %35 = vsyncpa [#allocation19 + $0x1], 0 }
  0x16   :  { %36 = vsyncpa [#allocation22], 0 }
  0x17   :  { %38 = vsyncpa [#allocation22 + $0x1], 0 }
  0x18   :  { %39 = vsyncpa [#allocation25], 0 }
  0x19   :  { %40 = vsyncpa [#allocation5], 0  ;;  %s3303_s18 = smov 0   ;;  %s3305_s19 = smov 0  }
  0x1a   :  { %s3307_s20 = smov 0   ;;  %s3309_s21 = smov 0  }
  0x1b   :  { %s3311_s22 = smov 0   ;;  %s3313_s23 = smov 0  }
  0x1c LB: > { %4176 = sst [smem:[#allocation37_spill]] %s3176_s19  ;;  %s3332_s24 = sadd.s32 4294967295, %s3192_s23   ;;  %s3192_s23 = sphi %s3313_s23, %s46_s23   ;;  %s3188_s22 = sphi %s3311_s22, %s4240_s22   ;;  %s3184_s21 = sphi %s3309_s21, %s4239_s21   ;;  %s3180_s20 = sphi %s3307_s20, %s4237_s20   ;;  %s3176_s19 = sphi %s3305_s19, %s4236_s19   ;;  %s3172_s18 = sphi %s3303_s18, %s4235_s18  }
  0x1d   : > { %4177 = sst [smem:[#allocation38_spill]] %s3180_s20  ;;  %s55_s25 = sadd.s32 1, %s3188_s22 }
  0x1e   : > { %4178 = sst [smem:[#allocation39_spill]] %s3184_s21  ;;  %p56_p0 = scmp.ge.s32.totalorder %s55_s25, 2 }
  0x1f   : > { %4179 = sst [smem:[#allocation40_spill]] %s3192_s23  ;;  %s91_s26 = sadd.s32 1, %s3180_s20 }
  0x20   : > { %4180 = sst [smem:[#allocation41_spill]] %s3332_s24  ;;  %p98_p1 = scmp.ne.s32.totalorder %s3180_s20, %s3176_s19 }
  0x21   : > { %p99_p2 = scmp.eq.s32.totalorder %s3192_s23, 0  ;;  %s4242_s25 = smov (%p56_p0, %s55_s25), 0 }
  0x22   : > { %4181 = sst [smem:[#allocation42_spill]] %s4242_s25  ;;  %p104_p4 = scmp.ne.s32.totalorder %s3176_s19, %s3172_s18 }
  0x23   : > { %p3341_p3 = por %p99_p2, %p98_p1  ;;  %s88_s28 = ssub.s32 %s3188_s22, %s4242_s25 }
  0x24   : > { %p4142_p5 = scmp.eq.s32.totalorder %s3332_s24, 0  ;;  %p89_p6 = scmp.eq.s32.totalorder %s88_s28, 0 }
  0x25   : > { %p2220_p7 = scmp.ge.s32.totalorder %s3192_s23, 1  ;;  %p469_p9 = scmp.lt.s32.totalorder %s3192_s23, 3 }
  0x26   : > { %p3352_p8 = por %p4142_p5, %p104_p4  ;;  %s3194_s17 = smov [#allocation24]  }
  0x27   : > { %s3358_s30 = scalar_select %p89_p6, %s3180_s20, %s91_s26  }
  0x28   : > { %s4183_s29 = scalar_select %p3352_p8, 1, 0 }
  0x29   : > { %4185 = sst [smem:[#allocation44_spill]] %s3358_s30  ;;  %p3360_p10 = pnand %p2220_p7, %p469_p9 }
  0x2a   : > { %4184 = sst [smem:[#allocation43_spill]] %s4183_s29  ;;  %s498_s18 = sshll.u32 %s3194_s17, 4  ;;  %s499_s18 = int_to_ptr.vmem [resolvable:$true] %s498_s18 }
  0x2b   : > { %s4186_s16 = scalar_select %p3360_p10, 1, 0 }
  0x2c   : > { %p2468_p11 = pneg %p3360_p10  ;;  %p2518_p12 = scmp.lt.s32.totalorder %s3192_s23, 2 }
  0x2d   : > { %4187 = sst [smem:[#allocation45_spill]] %s4186_s16  ;;  %s3374_s25 = sand.u32 1, %s3180_s20  }
  0x2e   : > { %p3369_p13 = pnand %p2468_p11, %p4142_p5  ;;  %p3378_p0 = pnand %p2518_p12, %p3341_p3 }
  0x2f   : > { %s3383_s30 = sand.u32 1, %s3192_s23   ;;  %s4190_s13 = sld [smem:[#allocation54_spill]] }
  0x30   : > { %s4188_s28 = scalar_select %p3369_p13, 1, 0 }
  0x31   : > { %s4189_s26 = scalar_select %p3378_p0, 1, 0 }
  0x32   : > { %p3393_p2 = pneg %p3369_p13 }
  0x34   : > { %s4191_s24 = scalar_select %p3393_p2, 1, 0 }
  0x35   : > { %s2640_s17 = scalar_lea.hbm %s4190_s13, 16 }
  0x36   : > { %p2641_p1 = scmp.ne.s32.totalorder %s4190_s13, %s2640_s17  ;;  %p2647_p6 = scmp.lt.u32.totalorder %s2640_s17, %s4190_s13 }
  0x38   : > { %p2643_p3 = pnand %p3393_p2, %p2641_p1 }
  0x3a   : > { %p2644_p4 = pneg %p2643_p3 }
  0x3c   : > { %p2649_p7 = pnand %p2647_p6, %p2644_p4 }
  0x3e   : > { %2652 = shalt.err (!%p2649_p7)
}
  0x3f   : > { %s2653_s15 = scalar_lea.vmem %s499_s18, 16  ;;  %s2660_s19 = scalar_lea.vmem %s499_s18, 32 }
  0x40   : > { %p2654_p9 = scmp.ne.s32.totalorder %s499_s18, %s2653_s15  ;;  %p2661_p5 = scmp.lt.s32.totalorder %s499_s18, %s499_s18 }
  0x41   : > { %p2662_p8 = scmp.lt.s32.totalorder %s2660_s19, %s2653_s15 }
  0x42   : > { %p2656_p11 = pnand %p2654_p9, %p3393_p2 }
  0x43   : > { %p2663_p10 = por %p2662_p8, %p2661_p5 }
  0x44   : > { %p2657_p12 = pneg %p2656_p11 }
  0x46   : > { %p2664_p0 = pnand %p2663_p10, %p2657_p12 }
  0x48   : > { %2667 = shalt.err (!%p2664_p0)
}
  0x49   : > { %2474 = dma.hbm_to_vmem [thread:$0]  (!%p3369_p13), %s4190_s13, 16, %s499_s18, [#allocation25]  }
  0x4a   : > { %s3410_s20 = sshll.u32 %s3188_s22, 4  ;;  %s523_s17 = scalar_lea.vmem [#allocation6], %s3374_s25 }
  0x4b   : > { %s530_s27 = sshll.u32 %s523_s17, 4  ;;  %s4192_s1 = sld [smem:[#allocation46_spill]]  ;;  %s3419_s27 = int_to_ptr.vmem [resolvable:$true] %s530_s27 }
  0x4c   : > { %p4193_p8 = scmp.ne.s32.totalorder %s4189_s26, 0 }
  0x4e   : > { %p3426_p10 = pneg %p4193_p8 }
  0x50   : > { %s4194_s18 = scalar_select %p3426_p10, 1, 0 }
  0x51   : > { %s3417_s19 = scalar_lea.hbm %s4192_s1, %s3410_s20  ;;  %s2673_s15 = scalar_lea.hbm %s4192_s1, 32 }
  0x52   : > { %s2668_s29 = scalar_lea.hbm %s3417_s19, 16  ;;  %p2674_p3 = scmp.lt.u32.totalorder %s3417_s19, %s4192_s1 }
  0x53   : > { %p2669_p5 = scmp.ne.s32.totalorder %s3417_s19, %s2668_s29  ;;  %p2675_p4 = scmp.lt.u32.totalorder %s2673_s15, %s2668_s29 }
  0x54   : > { %p2677_p7 = scmp.lt.u32.totalorder %s2668_s29, %s3417_s19 }
  0x55   : > { %p2671_p0 = pnand %p3426_p10, %p2669_p5  ;;  %p2676_p6 = por %p2675_p4, %p2674_p3 }
  0x57   : > { %p2672_p1 = pneg %p2671_p0  ;;  %p2678_p9 = por %p2677_p7, %p2676_p6 }
  0x59   : > { %p2679_p11 = pnand %p2678_p9, %p2672_p1 }
  0x5b   : > { %2682 = shalt.err (!%p2679_p11)
}
  0x5c   : > { %s2683_s21 = scalar_lea.vmem %s3419_s27, 16  ;;  %s3195_s23 = smov [#allocation6]  }
  0x5d   : > { %p2684_p12 = scmp.ne.s32.totalorder %s3419_s27, %s2683_s21  ;;  %s2688_s17 = sshll.u32 %s3195_s23, 4  ;;  %s2689_s17 = int_to_ptr.vmem [resolvable:$false] %s2688_s17 }
  0x5e   : > { %s2690_s13 = scalar_lea.vmem %s2689_s17, 32  ;;  %p2691_p13 = scmp.lt.s32.totalorder %s3419_s27, %s2689_s17 }
  0x5f   : > { %p2686_p5 = pnand %p2684_p12, %p3426_p10  ;;  %p2692_p2 = scmp.lt.s32.totalorder %s2690_s13, %s2683_s21 }
  0x61   : > { %p2687_p0 = pneg %p2686_p5  ;;  %p2693_p3 = por %p2692_p2, %p2691_p13 }
  0x63   : > { %p2694_p4 = pnand %p2693_p3, %p2687_p0 }
  0x65   : > { %2697 = shalt.err (!%p2694_p4)
}
  0x66   : > { %s4195_s16 = scalar_lea.sflag [#allocation7], %s3383_s30  ;;  %s3452_s29 = sshll.u32 %s3374_s25, 4 }
  0x67   : > { %2481 = dma.hbm_to_vmem [thread:$0]  (!%p4193_p8), %s3417_s19, 16, %s3419_s27, %s4195_s16  }
  0x68   : > { %s3455_s15 = sshll.u32 %s3188_s22, 8  ;;  %s4196_s3 = sld [smem:[#allocation47_spill]] }
  0x69   : > { %s558_s13 = scalar_lea.vmem [#allocation9], %s3452_s29  ;;  %s4155_s27 = scalar_lea.sflag [#allocation10], %s3383_s30 }
  0x6a   : > { %s565_s1 = sshll.u32 %s558_s13, 4  ;;  %s3464_s1 = int_to_ptr.vmem [resolvable:$true] %s565_s1 }
  0x6e   : > { %s3461_s17 = scalar_lea.hbm %s4196_s3, %s3455_s15  ;;  %s2703_s21 = scalar_lea.hbm %s4196_s3, 512 }
  0x6f   : > { %s2698_s19 = scalar_lea.hbm %s3461_s17, 256  ;;  %p2704_p6 = scmp.lt.u32.totalorder %s3461_s17, %s4196_s3 }
  0x70   : > { %p2699_p13 = scmp.ne.s32.totalorder %s3461_s17, %s2698_s19  ;;  %p2705_p7 = scmp.lt.u32.totalorder %s2703_s21, %s2698_s19 }
  0x71   : > { %p2707_p11 = scmp.lt.u32.totalorder %s2698_s19, %s3461_s17 }
  0x72   : > { %p2701_p2 = pnand %p2699_p13, %p3426_p10  ;;  %p2706_p9 = por %p2705_p7, %p2704_p6 }
  0x74   : > { %p2702_p1 = pneg %p2701_p2  ;;  %p2708_p12 = por %p2707_p11, %p2706_p9 }
  0x76   : > { %p2709_p5 = pnand %p2708_p12, %p2702_p1 }
  0x78   : > { %2712 = shalt.err (!%p2709_p5)
}
  0x79   : > { %s2713_s13 = scalar_lea.vmem %s3464_s1, 256  ;;  %s3196_s12 = smov [#allocation9]  }
  0x7a   : > { %p2714_p0 = scmp.ne.s32.totalorder %s3464_s1, %s2713_s13  ;;  %s2718_s16 = sshll.u32 %s3196_s12, 4  ;;  %s2719_s16 = int_to_ptr.vmem [resolvable:$false] %s2718_s16 }
  0x7b   : > { %s2720_s10 = scalar_lea.vmem %s2719_s16, 512  ;;  %p2721_p13 = scmp.lt.s32.totalorder %s3464_s1, %s2719_s16 }
  0x7c   : > { %p2716_p3 = pnand %p2714_p0, %p3426_p10  ;;  %p2722_p2 = scmp.lt.s32.totalorder %s2720_s10, %s2713_s13 }
  0x7e   : > { %p2717_p4 = pneg %p2716_p3  ;;  %p2723_p6 = por %p2722_p2, %p2721_p13 }
  0x80   : > { %p2724_p7 = pnand %p2723_p6, %p2717_p4 }
  0x82   : > { %2727 = shalt.err (!%p2724_p7)
}
  0x83   : > { %s4157_s19 = smov 64   ;;  %s3198_s21 = smov 4  }
  0x84   : > { %2487 = dma.hbm_to_vmem [thread:$0]  (!%p4193_p8), %s3461_s17, 256, %s3464_s1, %s4155_s27, %s4157_s19, %s4157_s19, %s3198_s21  }
  0x85   : > { %s4197_s5 = sld [smem:[#allocation48_spill]]  ;;  %s596_s16 = scalar_lea.vmem [#allocation12], %s3452_s29 }
  0x86   : > { %s603_s10 = sshll.u32 %s596_s16, 4  ;;  %s4156_s3 = scalar_lea.sflag [#allocation13], %s3383_s30  ;;  %s3500_s10 = int_to_ptr.vmem [resolvable:$true] %s603_s10 }
  0x8b   : > { %s3497_s12 = scalar_lea.hbm %s4197_s5, %s3455_s15  ;;  %s2733_s23 = scalar_lea.hbm %s4197_s5, 512 }
  0x8c   : > { %s2728_s8 = scalar_lea.hbm %s3497_s12, 256  ;;  %p2734_p12 = scmp.lt.u32.totalorder %s3497_s12, %s4197_s5 }
  0x8d   : > { %p2729_p1 = scmp.ne.s32.totalorder %s3497_s12, %s2728_s8  ;;  %p2735_p5 = scmp.lt.u32.totalorder %s2733_s23, %s2728_s8 }
  0x8e   : > { %p2737_p3 = scmp.lt.u32.totalorder %s2728_s8, %s3497_s12 }
  0x8f   : > { %p2731_p9 = pnand %p2729_p1, %p3426_p10  ;;  %p2736_p0 = por %p2735_p5, %p2734_p12 }
  0x91   : > { %p2732_p11 = pneg %p2731_p9  ;;  %p2738_p4 = por %p2737_p3, %p2736_p0 }
  0x93   : > { %p2739_p13 = pnand %p2738_p4, %p2732_p11 }
  0x95   : > { %2742 = shalt.err (!%p2739_p13)
}
  0x96   : > { %s2743_s16 = scalar_lea.vmem %s3500_s10, 256  ;;  %s3199_s1 = smov [#allocation12]  }
  0x97   : > { %p2744_p2 = scmp.ne.s32.totalorder %s3500_s10, %s2743_s16  ;;  %s2748_s17 = sshll.u32 %s3199_s1, 4  ;;  %s2749_s17 = int_to_ptr.vmem [resolvable:$false] %s2748_s17 }
  0x98   : > { %s2750_s27 = scalar_lea.vmem %s2749_s17, 512  ;;  %p2751_p1 = scmp.lt.s32.totalorder %s3500_s10, %s2749_s17 }
  0x99   : > { %p2746_p6 = pnand %p2744_p2, %p3426_p10  ;;  %p2752_p9 = scmp.lt.s32.totalorder %s2750_s27, %s2743_s16 }
  0x9b   : > { %p2747_p7 = pneg %p2746_p6  ;;  %p2753_p12 = por %p2752_p9, %p2751_p1 }
  0x9d   : > { %p2754_p5 = pnand %p2753_p12, %p2747_p7 }
  0x9f   : > { %2757 = shalt.err (!%p2754_p5)
}
  0xa0   : > { %2493 = dma.hbm_to_vmem [thread:$0]  (!%p4193_p8), %s3497_s12, 256, %s3500_s10, %s4156_s3, %s4157_s19, %s4157_s19, %s3198_s21  }
  0xa1   : > { %s4198_s7 = sld [smem:[#allocation49_spill]]  ;;  %s633_s16 = scalar_lea.vmem [#allocation15], %s3374_s25 }
  0xa2   : > { %s640_s1 = sshll.u32 %s633_s16, 4  ;;  %s4163_s17 = scalar_lea.sflag [#allocation16], %s3383_s30  ;;  %s641_s1 = int_to_ptr.vmem [resolvable:$true] %s640_s1 }
  0xa7   : > { %s3533_s13 = scalar_lea.hbm %s4198_s7, %s3410_s20  ;;  %s2763_s10 = scalar_lea.hbm %s4198_s7, 32 }
  0xa8   : > { %s2758_s27 = scalar_lea.hbm %s3533_s13, 16  ;;  %p2764_p4 = scmp.lt.u32.totalorder %s3533_s13, %s4198_s7 }
  0xa9   : > { %p2759_p11 = scmp.ne.s32.totalorder %s3533_s13, %s2758_s27  ;;  %p2765_p13 = scmp.lt.u32.totalorder %s2763_s10, %s2758_s27 }
  0xaa   : > { %p2767_p6 = scmp.lt.u32.totalorder %s2758_s27, %s3533_s13 }
  0xab   : > { %p2761_p0 = pnand %p2759_p11, %p3426_p10  ;;  %p2766_p2 = por %p2765_p13, %p2764_p4 }
  0xad   : > { %p2762_p3 = pneg %p2761_p0  ;;  %p2768_p7 = por %p2767_p6, %p2766_p2 }
  0xaf   : > { %p2769_p1 = pnand %p2768_p7, %p2762_p3 }
  0xb1   : > { %2772 = shalt.err (!%p2769_p1)
}
  0xb2   : > { %s2773_s16 = scalar_lea.vmem %s641_s1, 16  ;;  %s3200_s3 = smov [#allocation15]  }
  0xb3   : > { %p2774_p9 = scmp.ne.s32.totalorder %s641_s1, %s2773_s16  ;;  %s2778_s19 = sshll.u32 %s3200_s3, 4  ;;  %s2779_s19 = int_to_ptr.vmem [resolvable:$false] %s2778_s19 }
  0xb4   : > { %s2780_s5 = scalar_lea.vmem %s2779_s19, 32  ;;  %p2781_p11 = scmp.lt.s32.totalorder %s641_s1, %s2779_s19 }
  0xb5   : > { %p2776_p12 = pnand %p2774_p9, %p3426_p10  ;;  %p2782_p0 = scmp.lt.s32.totalorder %s2780_s5, %s2773_s16 }
  0xb7   : > { %p2777_p5 = pneg %p2776_p12  ;;  %p2783_p8 = por %p2782_p0, %p2781_p11 }
  0xb9   : > { %p2784_p4 = pnand %p2783_p8, %p2777_p5 }
  0xbb   : > { %2787 = shalt.err (!%p2784_p4)
}
  0xbc   : > { %p4199_p13 = scmp.ne.s32.totalorder %s4189_s26, 0  ;;  %s4200_s9 = sld [smem:[#allocation51_spill]] }
  0xbd   : > { %s668_s19 = scalar_lea.vmem [#allocation18], %s3452_s29  ;;  %s2241_s8 = sshll.u32 %s3374_s25, 6 }
  0xbe   : > { %2499 = dma.hbm_to_vmem [thread:$0]  (!%p4199_p13), %s3533_s13, 16, %s641_s1, %s4163_s17  }
  0xbf   : > { %s675_s10 = sshll.u32 %s668_s19, 4  ;;  %s4160_s23 = scalar_lea.sflag [#allocation19], %s3383_s30  ;;  %s3563_s10 = int_to_ptr.vmem [resolvable:$true] %s675_s10 }
  0xc2   : > { %s3560_s12 = scalar_lea.hbm %s4200_s9, %s3455_s15  ;;  %s2793_s15 = scalar_lea.hbm %s4200_s9, 512 }
  0xc3   : > { %s2788_s16 = scalar_lea.hbm %s3560_s12, 256  ;;  %p2794_p6 = scmp.lt.u32.totalorder %s3560_s12, %s4200_s9 }
  0xc4   : > { %p2789_p8 = scmp.ne.s32.totalorder %s3560_s12, %s2788_s16  ;;  %p2795_p7 = scmp.lt.u32.totalorder %s2793_s15, %s2788_s16 }
  0xc5   : > { %p2797_p9 = scmp.lt.u32.totalorder %s2788_s16, %s3560_s12 }
  0xc6   : > { %p2791_p3 = pnand %p2789_p8, %p3426_p10  ;;  %p2796_p1 = por %p2795_p7, %p2794_p6 }
  0xc8   : > { %p2792_p2 = pneg %p2791_p3  ;;  %p2798_p12 = por %p2797_p9, %p2796_p1 }
  0xca   : > { %p2799_p5 = pnand %p2798_p12, %p2792_p2 }
  0xcc   : > { %2802 = shalt.err (!%p2799_p5)
}
  0xcd   : > { %s2803_s29 = scalar_lea.vmem %s3563_s10, 256  ;;  %s3201_s3 = smov [#allocation18]  }
  0xce   : > { %p2804_p11 = scmp.ne.s32.totalorder %s3563_s10, %s2803_s29  ;;  %s2808_s19 = sshll.u32 %s3201_s3, 4  ;;  %s2809_s19 = int_to_ptr.vmem [resolvable:$false] %s2808_s19 }
  0xcf   : > { %s2810_s13 = scalar_lea.vmem %s2809_s19, 512  ;;  %p2811_p8 = scmp.lt.s32.totalorder %s3563_s10, %s2809_s19 }
  0xd0   : > { %p2806_p0 = pnand %p2804_p11, %p3426_p10  ;;  %p2812_p3 = scmp.lt.s32.totalorder %s2810_s13, %s2803_s29 }
  0xd2   : > { %p2807_p4 = pneg %p2806_p0  ;;  %p2813_p6 = por %p2812_p3, %p2811_p8 }
  0xd4   : > { %p2814_p7 = pnand %p2813_p6, %p2807_p4 }
  0xd6   : > { %2817 = shalt.err (!%p2814_p7)
}
  0xd7   : > { %s4201_s16 = smov 64   ;;  %s2299_s1 = sshll.u32 %s3188_s22, 10 }
  0xd8   : > { %2505 = dma.hbm_to_vmem [thread:$0]  (!%p4199_p13), %s3560_s12, 256, %s3563_s10, %s4160_s23, %s4201_s16, %s4201_s16, %s3198_s21  }
  0xd9   : > { %s3597_s27 = scalar_lea.hbm %s4128_s11, %s2299_s1  ;;  %s706_s29 = scalar_lea.vmem [#allocation21], %s2241_s8 }
  0xda   : > { %s713_s3 = sshll.u32 %s706_s29, 4  ;;  %s4162_s19 = scalar_lea.sflag [#allocation22], %s3383_s30  ;;  %s3601_s3 = int_to_ptr.vmem [resolvable:$true] %s713_s3 }
  0xdb   : > { %s2818_s13 = scalar_lea.hbm %s3597_s27, 1024  ;;  %s2823_s1 = scalar_lea.hbm %s4128_s11, 2048 }
  0xdc   : > { %p2819_p2 = scmp.ne.s32.totalorder %s3597_s27, %s2818_s13  ;;  %p2824_p12 = scmp.lt.u32.totalorder %s3597_s27, %s4128_s11 }
  0xdd   : > { %p2825_p5 = scmp.lt.u32.totalorder %s2823_s1, %s2818_s13  ;;  %p2827_p0 = scmp.lt.u32.totalorder %s2818_s13, %s3597_s27 }
  0xde   : > { %p2821_p1 = pnand %p2819_p2, %p3426_p10 }
  0xdf   : > { %p2826_p11 = por %p2825_p5, %p2824_p12 }
  0xe0   : > { %p2822_p9 = pneg %p2821_p1 }
  0xe1   : > { %p2828_p4 = por %p2827_p0, %p2826_p11 }
  0xe3   : > { %p2829_p8 = pnand %p2828_p4, %p2822_p9 }
  0xe5   : > { %2832 = shalt.err (!%p2829_p8)
}
  0xe6   : > { %s2833_s8 = scalar_lea.vmem %s3601_s3, 1024  ;;  %s3202_s29 = smov [#allocation21]  }
  0xe7   : > { %p2834_p3 = scmp.ne.s32.totalorder %s3601_s3, %s2833_s8  ;;  %s2838_s12 = sshll.u32 %s3202_s29, 4  ;;  %s2839_s12 = int_to_ptr.vmem [resolvable:$false] %s2838_s12 }
  0xe8   : > { %s2840_s10 = scalar_lea.vmem %s2839_s12, 2048  ;;  %p2841_p2 = scmp.lt.s32.totalorder %s3601_s3, %s2839_s12 }
  0xe9   : > { %p2836_p6 = pnand %p2834_p3, %p3426_p10  ;;  %p2842_p1 = scmp.lt.s32.totalorder %s2840_s10, %s2833_s8 }
  0xeb   : > { %p2837_p7 = pneg %p2836_p6  ;;  %p2843_p12 = por %p2842_p1, %p2841_p2 }
  0xed   : > { %p2844_p5 = pnand %p2843_p12, %p2837_p7 }
  0xef   : > { %2847 = shalt.err (!%p2844_p5)
}
  0xf0   : > { %2511 = dma.hbm_to_vmem [thread:$0]  (!%p4199_p13), %s3597_s27, 1024, %s3601_s3, %s4162_s19, %s4201_s16, %s4201_s16, %s3198_s21  }
  0xf1   : > { %s3203_s13 = smov [#allocation3]   ;;  %s2848_s8 = scalar_lea.hbm %s4117_s0, 256 }
  0xf2   : > { %s484_s1 = sshll.u32 %s3203_s13, 4  ;;  %p2849_p9 = scmp.ne.s32.totalorder %s4117_s0, %s2848_s8  ;;  %s485_s1 = int_to_ptr.vmem [resolvable:$true] %s484_s1 }
  0xf3   : > { %p4202_p11 = scmp.ne.s32.totalorder %s4191_s24, 0  ;;  %p2855_p8 = scmp.lt.u32.totalorder %s2848_s8, %s4117_s0 }
  0xf5   : > { %p2851_p0 = pnand %p2849_p9, %p4202_p11 }
  0xf7   : > { %p2852_p4 = pneg %p2851_p0 }
  0xf9   : > { %p2857_p3 = pnand %p2855_p8, %p2852_p4 }
  0xfb   : > { %2860 = shalt.err (!%p2857_p3)
}
  0xfc   : > { %s2861_s21 = scalar_lea.vmem %s485_s1, 256  ;;  %p2869_p1 = scmp.lt.s32.totalorder %s485_s1, %s485_s1 }
  0xfd   : > { %p2862_p6 = scmp.ne.s32.totalorder %s485_s1, %s2861_s21  ;;  %p2870_p12 = scmp.lt.s32.totalorder %s2861_s21, %s2861_s21 }
  0xff   : > { %p2864_p7 = pnand %p2862_p6, %p4202_p11  ;;  %p2871_p5 = por %p2870_p12, %p2869_p1 }
 0x101   : > { %p2865_p2 = pneg %p2864_p7 }
 0x103   : > { %p2872_p13 = pnand %p2871_p5, %p2865_p2 }
 0x105   : > { %2875 = shalt.err (!%p2872_p13)
}
 0x106   : > { %s3204_s16 = smov 128   ;;  %s3205_s23 = smov 8  }
 0x107   : > { %p4203_p9 = scmp.ne.s32.totalorder %s4188_s28, 0  ;;  %s3206_s13 = smov [#allocation26]  }
 0x108   : > { %s509_s15 = sshll.u32 %s3206_s13, 4  ;;  %s3652_s29 = scalar_lea.hbm %s4119_s2, %s3410_s20  ;;  %s510_s15 = int_to_ptr.vmem [resolvable:$true] %s509_s15 }
 0x109   : > { %2471 = dma.hbm_to_vmem [thread:$0]  (!%p4203_p9), %s4117_s0, 256, %s485_s1, [#allocation4], %s3204_s16, %s3204_s16, %s3205_s23  }
 0x10a   : > { %s540_s12 = scalar_lea.vmem [#allocation8], %s3374_s25  ;;  %s2876_s17 = scalar_lea.hbm %s4131_s14, 16 }
 0x10b   : > { %s547_s10 = sshll.u32 %s540_s12, 4  ;;  %p2877_p13 = scmp.ne.s32.totalorder %s4131_s14, %s2876_s17  ;;  %s548_s10 = int_to_ptr.vmem [resolvable:$true] %s547_s10 }
 0x10c   : > { %p2883_p8 = scmp.lt.u32.totalorder %s2876_s17, %s4131_s14 }
 0x10d   : > { %p2879_p0 = pnand %p2877_p13, %p4202_p11 }
 0x10f   : > { %p2880_p4 = pneg %p2879_p0 }
 0x111   : > { %p2885_p3 = pnand %p2883_p8, %p2880_p4 }
 0x113   : > { %2888 = shalt.err (!%p2885_p3)
}
 0x114   : > { %s2889_s23 = scalar_lea.vmem %s510_s15, 16  ;;  %s2896_s19 = scalar_lea.vmem %s510_s15, 32 }
 0x115   : > { %p2890_p6 = scmp.ne.s32.totalorder %s510_s15, %s2889_s23  ;;  %p2897_p1 = scmp.lt.s32.totalorder %s510_s15, %s510_s15 }
 0x116   : > { %p2898_p12 = scmp.lt.s32.totalorder %s2896_s19, %s2889_s23 }
 0x117   : > { %p2892_p7 = pnand %p2890_p6, %p4202_p11 }
 0x118   : > { %p2899_p5 = por %p2898_p12, %p2897_p1 }
 0x119   : > { %p2893_p2 = pneg %p2892_p7 }
 0x11b   : > { %p2900_p10 = pnand %p2899_p5, %p2893_p2 }
 0x11d   : > { %2903 = shalt.err (!%p2900_p10)
}
 0x11e   : > { %2477 = dma.hbm_to_vmem [thread:$0]  (!%p4203_p9), %s4131_s14, 16, %s510_s15, [#allocation25]  }
 0x11f   : > { %s2904_s24 = scalar_lea.hbm %s3652_s29, 16  ;;  %p4204_p13 = scmp.ne.s32.totalorder %s4194_s18, 0 }
 0x120   : > { %p2905_p11 = scmp.ne.s32.totalorder %s3652_s29, %s2904_s24  ;;  %s2909_s3 = scalar_lea.hbm %s4119_s2, 32 }
 0x121   : > { %p2910_p10 = scmp.lt.u32.totalorder %s3652_s29, %s4119_s2  ;;  %p2911_p8 = scmp.lt.u32.totalorder %s2909_s3, %s2904_s24 }
 0x122   : > { %p2907_p0 = pnand %p2905_p11, %p4204_p13  ;;  %p2913_p6 = scmp.lt.u32.totalorder %s2904_s24, %s3652_s29 }
 0x123   : > { %p2912_p3 = por %p2911_p8, %p2910_p10 }
 0x124   : > { %p2908_p4 = pneg %p2907_p0 }
 0x125   : > { %p2914_p7 = por %p2913_p6, %p2912_p3 }
 0x127   : > { %p2915_p2 = pnand %p2914_p7, %p2908_p4 }
 0x129   : > { %2918 = shalt.err (!%p2915_p2)
}
 0x12a   : > { %s2919_s15 = scalar_lea.vmem %s548_s10, 16  ;;  %s3207_s5 = smov [#allocation8]  }
 0x12b   : > { %p2920_p9 = scmp.ne.s32.totalorder %s548_s10, %s2919_s15  ;;  %s2924_s8 = sshll.u32 %s3207_s5, 4  ;;  %s2925_s8 = int_to_ptr.vmem [resolvable:$false] %s2924_s8 }
 0x12c   : > { %s2926_s12 = scalar_lea.vmem %s2925_s8, 32  ;;  %p2927_p5 = scmp.lt.s32.totalorder %s548_s10, %s2925_s8 }
 0x12d   : > { %p2922_p1 = pnand %p2920_p9, %p4204_p13  ;;  %p2928_p11 = scmp.lt.s32.totalorder %s2926_s12, %s2919_s15 }
 0x12f   : > { %p2923_p12 = pneg %p2922_p1  ;;  %p2929_p0 = por %p2928_p11, %p2927_p5 }
 0x131   : > { %p2930_p8 = pnand %p2929_p0, %p2923_p12 }
 0x133   : > { %2933 = shalt.err (!%p2930_p8)
}
 0x134   : > { %p4205_p10 = scmp.ne.s32.totalorder %s4189_s26, 0  ;;  %s4206_s21 = scalar_lea.sflag [#allocation7], %s3383_s30 }
 0x135   : > { %s3696_s23 = scalar_lea.hbm %s4121_s4, %s3410_s20  ;;  %s578_s19 = scalar_lea.vmem [#allocation11], %s3374_s25 }
 0x136   : > { %2484 = dma.hbm_to_vmem [thread:$0]  (!%p4205_p10), %s3652_s29, 16, %s548_s10, %s4206_s21  }
 0x137   : > { %s585_s7 = sshll.u32 %s578_s19, 4  ;;  %s2934_s9 = scalar_lea.hbm %s3696_s23, 16  ;;  %s586_s7 = int_to_ptr.vmem [resolvable:$true] %s585_s7 }
 0x138   : > { %p2935_p4 = scmp.ne.s32.totalorder %s3696_s23, %s2934_s9  ;;  %s2939_s29 = scalar_lea.hbm %s4121_s4, 32 }
 0x139   : > { %p2940_p7 = scmp.lt.u32.totalorder %s3696_s23, %s4121_s4  ;;  %p2941_p2 = scmp.lt.u32.totalorder %s2939_s29, %s2934_s9 }
 0x13a   : > { %p2937_p3 = pnand %p2935_p4, %p4204_p13  ;;  %p2943_p1 = scmp.lt.u32.totalorder %s2934_s9, %s3696_s23 }
 0x13b   : > { %p2942_p9 = por %p2941_p2, %p2940_p7 }
 0x13c   : > { %p2938_p6 = pneg %p2937_p3 }
 0x13d   : > { %p2944_p12 = por %p2943_p1, %p2942_p9 }
 0x13f   : > { %p2945_p5 = pnand %p2944_p12, %p2938_p6 }
 0x141   : > { %2948 = shalt.err (!%p2945_p5)
}
 0x142   : > { %s2949_s3 = scalar_lea.vmem %s586_s7, 16  ;;  %s3208_s28 = smov [#allocation11]  }
 0x143   : > { %p2950_p11 = scmp.ne.s32.totalorder %s586_s7, %s2949_s3  ;;  %s2954_s13 = sshll.u32 %s3208_s28, 4  ;;  %s2955_s13 = int_to_ptr.vmem [resolvable:$false] %s2954_s13 }
 0x144   : > { %s2956_s15 = scalar_lea.vmem %s2955_s13, 32  ;;  %p2957_p4 = scmp.lt.s32.totalorder %s586_s7, %s2955_s13 }
 0x145   : > { %p2952_p0 = pnand %p2950_p11, %p4204_p13  ;;  %p2958_p3 = scmp.lt.s32.totalorder %s2956_s15, %s2949_s3 }
 0x147   : > { %p2953_p8 = pneg %p2952_p0  ;;  %p2959_p10 = por %p2958_p3, %p2957_p4 }
 0x149   : > { %p2960_p2 = pnand %p2959_p10, %p2953_p8 }
 0x14b   : > { %2963 = shalt.err (!%p2960_p2)
}
 0x14c   : > { %p4207_p7 = scmp.ne.s32.totalorder %s4189_s26, 0  ;;  %s4208_s5 = scalar_lea.sflag [#allocation10], %s3383_s30 }
 0x14d   : > { %s3722_s21 = scalar_lea.hbm %s4123_s6, %s3410_s20  ;;  %s616_s1 = scalar_lea.vmem [#allocation14], %s3374_s25 }
 0x14e   : > { %2490 = dma.hbm_to_vmem [thread:$0]  (!%p4207_p7), %s3696_s23, 16, %s586_s7, %s4208_s5  }
 0x14f   : > { %s623_s16 = sshll.u32 %s616_s1, 4  ;;  %s2964_s19 = scalar_lea.hbm %s3722_s21, 16  ;;  %s624_s16 = int_to_ptr.vmem [resolvable:$true] %s623_s16 }
 0x150   : > { %p2965_p10 = scmp.ne.s32.totalorder %s3722_s21, %s2964_s19  ;;  %s2969_s23 = scalar_lea.hbm %s4123_s6, 32 }
 0x151   : > { %p2970_p1 = scmp.lt.u32.totalorder %s3722_s21, %s4123_s6  ;;  %p2971_p12 = scmp.lt.u32.totalorder %s2969_s23, %s2964_s19 }
 0x152   : > { %p2967_p6 = pnand %p2965_p10, %p4204_p13  ;;  %p2973_p11 = scmp.lt.u32.totalorder %s2964_s19, %s3722_s21 }
 0x153   : > { %p2972_p5 = por %p2971_p12, %p2970_p1 }
 0x154   : > { %p2968_p9 = pneg %p2967_p6 }
 0x155   : > { %p2974_p0 = por %p2973_p11, %p2972_p5 }
 0x157   : > { %p2975_p8 = pnand %p2974_p0, %p2968_p9 }
 0x159   : > { %2978 = shalt.err (!%p2975_p8)
}
 0x15a   : > { %s2979_s29 = scalar_lea.vmem %s624_s16, 16  ;;  %s3209_s10 = smov [#allocation14]  }
 0x15b   : > { %p2980_p4 = scmp.ne.s32.totalorder %s624_s16, %s2979_s29  ;;  %s2984_s27 = sshll.u32 %s3209_s10, 4  ;;  %s2985_s27 = int_to_ptr.vmem [resolvable:$false] %s2984_s27 }
 0x15c   : > { %s2986_s3 = scalar_lea.vmem %s2985_s27, 32  ;;  %p2987_p10 = scmp.lt.s32.totalorder %s624_s16, %s2985_s27 }
 0x15d   : > { %p2982_p3 = pnand %p2980_p4, %p4204_p13  ;;  %p2988_p6 = scmp.lt.s32.totalorder %s2986_s3, %s2979_s29 }
 0x15f   : > { %p2983_p2 = pneg %p2982_p3  ;;  %p2989_p7 = por %p2988_p6, %p2987_p10 }
 0x161   : > { %p2990_p1 = pnand %p2989_p7, %p2983_p2 }
 0x163   : > { %2993 = shalt.err (!%p2990_p1)
}
 0x164   : > { %p4209_p12 = scmp.ne.s32.totalorder %s4189_s26, 0  ;;  %s4210_s28 = scalar_lea.sflag [#allocation13], %s3383_s30 }
 0x165   : > { %s4211_s5 = sld [smem:[#allocation50_spill]]  ;;  %s650_s12 = scalar_lea.vmem [#allocation17], %s3374_s25 }
 0x166   : > { %2496 = dma.hbm_to_vmem [thread:$0]  (!%p4209_p12), %s3722_s21, 16, %s624_s16, %s4210_s28  }
 0x167   : > { %s657_s1 = sshll.u32 %s650_s12, 4  ;;  %s658_s1 = int_to_ptr.vmem [resolvable:$true] %s657_s1 }
 0x16b   : > { %s3748_s8 = scalar_lea.hbm %s4211_s5, %s3410_s20  ;;  %s2999_s21 = scalar_lea.hbm %s4211_s5, 32 }
 0x16c   : > { %s2994_s19 = scalar_lea.hbm %s3748_s8, 16  ;;  %p3000_p11 = scmp.lt.u32.totalorder %s3748_s8, %s4211_s5 }
 0x16d   : > { %p2995_p7 = scmp.ne.s32.totalorder %s3748_s8, %s2994_s19  ;;  %p3001_p0 = scmp.lt.u32.totalorder %s2999_s21, %s2994_s19 }
 0x16e   : > { %p3003_p4 = scmp.lt.u32.totalorder %s2994_s19, %s3748_s8 }
 0x16f   : > { %p2997_p9 = pnand %p2995_p7, %p4204_p13  ;;  %p3002_p8 = por %p3001_p0, %p3000_p11 }
 0x171   : > { %p2998_p5 = pneg %p2997_p9  ;;  %p3004_p3 = por %p3003_p4, %p3002_p8 }
 0x173   : > { %p3005_p2 = pnand %p3004_p3, %p2998_p5 }
 0x175   : > { %3008 = shalt.err (!%p3005_p2)
}
 0x176   : > { %s3009_s7 = scalar_lea.vmem %s658_s1, 16  ;;  %s3210_s17 = smov [#allocation17]  }
 0x177   : > { %p3010_p10 = scmp.ne.s32.totalorder %s658_s1, %s3009_s7  ;;  %s3014_s29 = sshll.u32 %s3210_s17, 4  ;;  %s3015_s29 = int_to_ptr.vmem [resolvable:$false] %s3014_s29 }
 0x178   : > { %s3016_s10 = scalar_lea.vmem %s3015_s29, 32  ;;  %p3017_p7 = scmp.lt.s32.totalorder %s658_s1, %s3015_s29 }
 0x179   : > { %p3012_p6 = pnand %p3010_p10, %p4204_p13  ;;  %p3018_p9 = scmp.lt.s32.totalorder %s3016_s10, %s3009_s7 }
 0x17b   : > { %p3013_p1 = pneg %p3012_p6  ;;  %p3019_p12 = por %p3018_p9, %p3017_p7 }
 0x17d   : > { %p3020_p0 = pnand %p3019_p12, %p3013_p1 }
 0x17f   : > { %3023 = shalt.err (!%p3020_p0)
}
 0x180   : > { %p4212_p11 = scmp.ne.s32.totalorder %s4189_s26, 0  ;;  %s4213_s27 = scalar_lea.sflag [#allocation16], %s3383_s30 }
 0x181   : > { %s4214_s13 = sld [smem:[#allocation52_spill]]  ;;  %s688_s12 = scalar_lea.vmem [#allocation20], %s3374_s25 }
 0x182   : > { %2502 = dma.hbm_to_vmem [thread:$0]  (!%p4212_p11), %s3748_s8, 16, %s658_s1, %s4213_s27  }
 0x183   : > { %s695_s19 = sshll.u32 %s688_s12, 4  ;;  %s696_s19 = int_to_ptr.vmem [resolvable:$true] %s695_s19 }
 0x187   : > { %s3774_s15 = scalar_lea.hbm %s4214_s13, %s3410_s20  ;;  %s3029_s8 = scalar_lea.hbm %s4214_s13, 32 }
 0x188   : > { %s3024_s9 = scalar_lea.hbm %s3774_s15, 16  ;;  %p3030_p4 = scmp.lt.u32.totalorder %s3774_s15, %s4214_s13 }
 0x189   : > { %p3025_p12 = scmp.ne.s32.totalorder %s3774_s15, %s3024_s9  ;;  %p3031_p3 = scmp.lt.u32.totalorder %s3029_s8, %s3024_s9 }
 0x18a   : > { %p3033_p10 = scmp.lt.u32.totalorder %s3024_s9, %s3774_s15 }
 0x18b   : > { %p3027_p5 = pnand %p3025_p12, %p4204_p13  ;;  %p3032_p2 = por %p3031_p3, %p3030_p4 }
 0x18d   : > { %p3028_p8 = pneg %p3027_p5  ;;  %p3034_p6 = por %p3033_p10, %p3032_p2 }
 0x18f   : > { %p3035_p1 = pnand %p3034_p6, %p3028_p8 }
 0x191   : > { %3038 = shalt.err (!%p3035_p1)
}
 0x192   : > { %s3039_s23 = scalar_lea.vmem %s696_s19, 16  ;;  %s3211_s7 = smov [#allocation20]  }
 0x193   : > { %p3040_p7 = scmp.ne.s32.totalorder %s696_s19, %s3039_s23  ;;  %s3044_s17 = sshll.u32 %s3211_s7, 4  ;;  %s3045_s17 = int_to_ptr.vmem [resolvable:$false] %s3044_s17 }
 0x194   : > { %s3046_s29 = scalar_lea.vmem %s3045_s17, 32  ;;  %p3047_p12 = scmp.lt.s32.totalorder %s696_s19, %s3045_s17 }
 0x195   : > { %p3042_p9 = pnand %p3040_p7, %p4204_p13  ;;  %p3048_p5 = scmp.lt.s32.totalorder %s3046_s29, %s3039_s23 }
 0x197   : > { %p3043_p0 = pneg %p3042_p9  ;;  %p3049_p11 = por %p3048_p5, %p3047_p12 }
 0x199   : > { %p3050_p3 = pnand %p3049_p11, %p3043_p0 }
 0x19b   : > { %3053 = shalt.err (!%p3050_p3)
}
 0x19c   : > { %p4215_p4 = scmp.ne.s32.totalorder %s4189_s26, 0  ;;  %s4216_s10 = scalar_lea.sflag [#allocation19], %s3383_s30 }
 0x19d   : > { %s4217_s28 = sld [smem:[#allocation53_spill]]  ;;  %s726_s9 = scalar_lea.vmem [#allocation23], %s3374_s25 }
 0x19e   : > { %2508 = dma.hbm_to_vmem [thread:$0]  (!%p4215_p4), %s3774_s15, 16, %s696_s19, %s4216_s10  }
 0x19f   : > { %s733_s24 = sshll.u32 %s726_s9, 4  ;;  %s734_s24 = int_to_ptr.vmem [resolvable:$true] %s733_s24 }
 0x1a3   : > { %s3800_s12 = scalar_lea.hbm %s4217_s28, %s3410_s20  ;;  %s3059_s15 = scalar_lea.hbm %s4217_s28, 32 }
 0x1a4   : > { %s3054_s21 = scalar_lea.hbm %s3800_s12, 16  ;;  %p3060_p10 = scmp.lt.u32.totalorder %s3800_s12, %s4217_s28 }
 0x1a5   : > { %p3055_p11 = scmp.ne.s32.totalorder %s3800_s12, %s3054_s21  ;;  %p3061_p6 = scmp.lt.u32.totalorder %s3059_s15, %s3054_s21 }
 0x1a6   : > { %p3063_p7 = scmp.lt.u32.totalorder %s3054_s21, %s3800_s12 }
 0x1a7   : > { %p3057_p8 = pnand %p3055_p11, %p4204_p13  ;;  %p3062_p1 = por %p3061_p6, %p3060_p10 }
 0x1a9   : > { %p3058_p2 = pneg %p3057_p8  ;;  %p3064_p9 = por %p3063_p7, %p3062_p1 }
 0x1ab   : > { %p3065_p0 = pnand %p3064_p9, %p3058_p2 }
 0x1ad   : > { %3068 = shalt.err (!%p3065_p0)
}
 0x1ae   : > { %s3069_s25 = scalar_lea.vmem %s734_s24, 16  ;;  %s3212_s20 = smov [#allocation23]  }
 0x1af   : > { %p3070_p12 = scmp.ne.s32.totalorder %s734_s24, %s3069_s25  ;;  %s3074_s23 = sshll.u32 %s3212_s20, 4  ;;  %s3075_s23 = int_to_ptr.vmem [resolvable:$false] %s3074_s23 }
 0x1b0   : > { %s3076_s7 = scalar_lea.vmem %s3075_s23, 32  ;;  %p3077_p11 = scmp.lt.s32.totalorder %s734_s24, %s3075_s23 }
 0x1b1   : > { %p3072_p5 = pnand %p3070_p12, %p4204_p13  ;;  %p3078_p8 = scmp.lt.s32.totalorder %s3076_s7, %s3069_s25 }
 0x1b3   : > { %p3073_p3 = pneg %p3072_p5  ;;  %p3079_p4 = por %p3078_p8, %p3077_p11 }
 0x1b5   : > { %p3080_p6 = pnand %p3079_p4, %p3073_p3 }
 0x1b7   : > { %3083 = shalt.err (!%p3080_p6)
}
 0x1b8   : > { %p4218_p10 = scmp.ne.s32.totalorder %s4189_s26, 0  ;;  %s4219_s17 = scalar_lea.sflag [#allocation22], %s3383_s30 }
 0x1b9   : > { %s4220_s29 = sld [smem:[#allocation45_spill]] }
 0x1ba   : > { %2514 = dma.hbm_to_vmem [thread:$0]  (!%p4218_p10), %s3800_s12, 16, %s734_s24, %s4219_s17  }
 0x1bf   : > { %p4221_p2 = scmp.ne.s32.totalorder %s4220_s29, 0 }
 0x1c0   : > { %s4222_s18 = sld [smem:[#allocation41_spill]] (!%p4221_p2) }
 0x1c1   : > { %742 = sbr.rel (%p4221_p2) target bundleno = 3907 (0xf43), region = 80 }
 0x1c6   : > { %p4223_p13 = scmp.eq.s32.totalorder (!%p4221_p2), %s4222_s18, 0 }
 0x1c8   : > { %3135 = dma.done.wait (%p4223_p13), [#allocation4], 256   ;;  %p4224_p1 = pmov %p4223_p13 }
 0x1c9   : > { %s4225_s10 = sld [smem:[#allocation37_spill]]  ;;  %s4226_s27 = sld [smem:[#allocation43_spill]] }
 0x1ca   : > { %3137 = vsyncadd (%p4224_p1), [#allocation4], 4294967040  ;;  %s3829_s3 = sand.u32 1, %s4222_s18  }
 0x1cb   : > { %s749_s30 = scalar_lea.sflag [#allocation7], %s3829_s3 }
 0x1cf   : > { %s3832_s26 = sand.u32 1, %s4225_s10   ;;  %p4227_p4 = scmp.ne.s32.totalorder %s4226_s27, 0 }
 0x1d0   : > { %s751_s12 = scalar_lea.vmem [#allocation6], %s3832_s26 }
 0x1d1   : > { %3139 = dma.done.wait (%p4227_p4), %s749_s30, 32  }
 0x1d2   : > { %3141 = vsyncadd (%p4227_p4), %s749_s30, 4294967264  ;;  %s3841_s9 = sshll.u32 %s3832_s26, 4  ;;  %s759_s24 = scalar_lea.vmem [#allocation8], %s3832_s26 }
 0x1d3   : > { %s765_s21 = scalar_lea.sflag [#allocation10], %s3829_s3  ;;  %s768_s8 = scalar_lea.vmem [#allocation9], %s3841_s9 }
 0x1d4   : > { %3143 = dma.done.wait (%p4227_p4), %s765_s21, 272  }
 0x1d5   : > { %3145 = vsyncadd (%p4227_p4), %s765_s21, 4294967024  ;;  %s776_s1 = scalar_lea.vmem [#allocation11], %s3832_s26  ;;  %s782_s15 = scalar_lea.sflag [#allocation13], %s3829_s3 }
 0x1d6   : > { %s785_s19 = scalar_lea.vmem [#allocation12], %s3841_s9 }
 0x1d7   : > { %3147 = dma.done.wait (%p4227_p4), %s782_s15, 272  }
 0x1d8   : > { %3149 = vsyncadd (%p4227_p4), %s782_s15, 4294967024  ;;  %s793_s16 = scalar_lea.vmem [#allocation14], %s3832_s26  ;;  %s799_s25 = scalar_lea.sflag [#allocation16], %s3829_s3 }
 0x1d9   : > { %s801_s20 = scalar_lea.vmem [#allocation15], %s3832_s26 }
 0x1da   : > { %3151 = dma.done.wait (%p4227_p4), %s799_s25, 32  }
 0x1db   : > { %3153 = vsyncadd (%p4227_p4), %s799_s25, 4294967264  ;;  %s809_s23 = scalar_lea.vmem [#allocation17], %s3832_s26  ;;  %s815_s7 = scalar_lea.sflag [#allocation19], %s3829_s3 }
 0x1dc   : > { %s818_s17 = scalar_lea.vmem [#allocation18], %s3841_s9 }
 0x1dd   : > { %3155 = dma.done.wait (%p4227_p4), %s815_s7, 272  }
 0x1de   : > { %3157 = vsyncadd (%p4227_p4), %s815_s7, 4294967024  ;;  %s2250_s29 = sshll.u32 %s3832_s26, 6  ;;  %s826_s10 = scalar_lea.vmem [#allocation20], %s3832_s26 }
 0x1df   : > { %s832_s30 = scalar_lea.sflag [#allocation22], %s3829_s3  ;;  %s3874_s21 = scalar_lea.vmem [#allocation21], %s2250_s29 }
 0x1e0   : > { %3159 = dma.done.wait (%p4227_p4), %s832_s30, 1040  }
 0x1e1   : > { %3161 = vsyncadd (%p4227_p4), %s832_s30, 4294966256  ;;  %s843_s15 = scalar_lea.vmem [#allocation23], %s3832_s26  ;;  %p4228_p7 = pmov %p4224_p1 }
 0x1e2   : > { %p4229_p9 = pmov %p4224_p1 }
 0x1e3   : > { %3163 = dma.done.wait (%p4228_p7), [#allocation25], 32  }
 0x1e4   : > { %3165 = vsyncadd (%p4229_p9), [#allocation25], 4294967264  ;;  %s4230_s25 = sld [smem:[#allocation39_spill]] }
 0x1ea   : > { %p2253_p0 = scmp.ne.s32.totalorder %s4230_s25, 0 }
 0x1eb   : > { %v947_v0 = vld [vmem:[#allocation3] sm:$0xff] (!%p2253_p0)  ;;  %vm949_vm0 = vcmask (!%p2253_p0), 261120   ;;  %v948_v1 = vld [vmem:[#allocation3 + $0x8] sm:$0xff] (!%p2253_p0) }
 0x1ec   : > { %946 = sbr.rel (%p2253_p0) target bundleno = 499 (0x1f3), region = 144  ;;  %950 = vst.msk [vmem:[#allocation2] sm:$0xff] (!%p2253_p0), %vm949_vm0, %v947_v0  ;;  %951 = vst.msk [vmem:[#allocation2 + $0x8] sm:$0xff] (!%p2253_p0), %vm949_vm0, %v948_v1 }
 0x1f3 PF: > { %v3886_v2 = vld [vmem:[#allocation2] sm:$0xff]  ;;  %vm956_vm1 = vcmask 261120   ;;  %v3888_v3 = vld [vmem:[#allocation2 + $0x8] sm:$0xff]  ;;  %v3213_v17 = vmov 0.0   ;;  %vm3214_vm2 = vmmov 0   ;;  %s3215_s18 = smov 96   ;;  %v1068_v49 = vlaneseq }
 0x1f4   : > { %v957_v4 = vsel %vm956_vm1, %v3886_v2, 0.0  ;;  %v960_v5 = vsel %vm956_vm1, %v3888_v3, 0.0  ;;  %v2594_v16 = vld [vmem:[%s768_s8] sm:$0xff]   ;;  %2336 = vmatprep.subr.bf16.mxu0 %v3213_v17  ;;  %2356 = vmatprep.subr.bf16.mxu1 %v3213_v17  ;;  %v2595_v18 = vld [vmem:[%s768_s8 + $0x8] sm:$0xff]   ;;  %vm1078_vm3 = vcmask 130048   ;;  %vm1178_vm5 = vcmask 64512  }
 0x1f5   : > { %958 = vadd.xlane.f32.xlu0 %v957_v4  ;;  %2337 = vmatpush3.bf16.msra.mxu0 %v2594_v16  ;;  %v2254_v27 = vld [vmem:[%s751_s12] ss:$0 sm:$0xff]  ;;  %v3937_v50 = vshrl.u32 %v1068_v49, 7  ;;  %v3939_v51 = vand.u32 127, %v1068_v49  ;;  %s3216_s27 = smov 64   ;;  %s3217_s3 = smov 80  }
 0x1f6   : > { %2340 = vmatprep.mubr.msk.bf16.mxu0 %vm3214_vm2, %v3213_v17  ;;  %2338 = vmatprep.subr.bf16.mxu0 %v3213_v17  ;;  %v2255_v31 = vld [vmem:[%s759_s24] ss:$0 sm:$0xff]  ;;  %vm1208_vm6 = vcmask 1043456   ;;  %s3218_s12 = smov 112   ;;  %s3219_s24 = smov 48  }
 0x1f7   : > { %2358 = vmatprep.mubr.msk.bf16.mxu1 %vm3214_vm2, %v3213_v17  ;;  %v2256_v36 = vld [vmem:[%s776_s1] ss:$0 sm:$0xff]  ;;  %vm1072_vm4 = vcmp.le.s32.totalorder %v3939_v51, %v3937_v50  ;;  %s3220_s8 = smov 16   ;;  %s4231_s9 = sld [smem:[#allocation39_spill]] }
 0x1f9   : > { %961 = vadd.xlane.f32.xlu0 %v960_v5  ;;  %2339 = vmatpush3.bf16.msra.mxu0 %v2595_v18 }
 0x1fa   : > { %2344 = vmatprep.subr.bf16.mxu0 %v3213_v17 }
 0x1fd   : > { %p2287_p12 = scmp.ne.s32.totalorder %s4231_s9, 1 }
 0x1fe   : > { %vm1899_vm7 = vcmask (!%p2287_p12), 257024  }
 0x282   : > { %v959_v6 = vpop.xlane.xlu0 %958 }
 0x283   : > { %v964_v7 = vmul.f32 0.03125, %v959_v6 }
 0x285   : > { %v966_v8 = vsub.f32 %v3886_v2, %v964_v7 }
 0x286   : > { %v962_v9 = vpop.xlane.xlu0 %961 }
 0x287   : > { %v965_v10 = vmul.f32 0.03125, %v962_v9  ;;  %v968_v11 = vmul.f32 %v966_v8, %v966_v8 }
 0x289   : > { %v967_v12 = vsub.f32 %v3888_v3, %v965_v10  ;;  %v970_v13 = vsel %vm956_vm1, %v968_v11, 0.0 }
 0x28a   : > { %971 = vadd.xlane.f32.xlu1 %v970_v13 }
 0x28b   : > { %v969_v14 = vmul.f32 %v967_v12, %v967_v12 }
 0x28d   : > { %v973_v15 = vsel %vm956_vm1, %v969_v14, 0.0 }
 0x28e   : > { %974 = vadd.xlane.f32.xlu1 %v973_v15 }
 0x317   : > { %v972_v19 = vpop.xlane.xlu1 %971 }
 0x318   : > { %v976_v20 = vmul.f32 0.03125, %v972_v19 }
 0x31a   : > { %v978_v21 = vadd.f32 1e-05, %v976_v20 }
 0x31b   : > { %v975_v22 = vpop.xlane.xlu1 %974 }
 0x31c   : > { %2608 = vrsqrt.f32 %v978_v21  ;;  %v977_v23 = vmul.f32 0.03125, %v975_v22 }
 0x31e   : > { %v979_v24 = vadd.f32 1e-05, %v977_v23 }
 0x320   : > { %2610 = vrsqrt.f32 %v979_v24 }
 0x326   : > { %v2609_v25 = vpop.eup %2608 }
 0x327   : > { %v982_v26 = vmul.f32 %v2609_v25, %v966_v8 }
 0x329   : > { %v990_v30 = vmul.f32 %v2254_v27, %v982_v26 }
 0x32a   : > { %v2611_v28 = vpop.eup %2610 }
 0x32b   : > { %v983_v29 = vmul.f32 %v2611_v28, %v967_v12  ;;  %v998_v33 = vadd.f32 %v2255_v31, %v990_v30 }
 0x32d   : > { %v991_v32 = vmul.f32 %v2254_v27, %v983_v29 }
 0x32f   : > { %v999_v34 = vadd.f32 %v2255_v31, %v991_v32 }
 0x331   : > { %v1000_v35 = vpack.c.bf16 %v999_v34, %v998_v33 }
 0x333   : > { %2341 = vmatmul.mubr.msk.bf16.vlgmr.msra.gmra.mrb[0].mxu0 %vm956_vm1, %v1000_v35 }
 0x334   : > { %2346 = vmatprep.mubr.msk.bf16.mxu0 %vm3214_vm2, %v3213_v17 }
 0x406   : > { %v1061_v37 = vpop.f32.mrb[0].mxu0 }
 0x407   : > { %v1062_v38 = vadd.f32 %v2256_v36, %v1061_v37  ;;  %v2342_v39 = vpop.f32.mrb[1].mxu0 }
 0x408   : > { %v1064_v40 = vpop.f32.mrb[2].mxu0 }
 0x409   : > { %v3919_v41 = vpack.c.bf16 %v1062_v38, %v1062_v38  ;;  %v1065_v42 = vadd.f32 %v2256_v36, %v1064_v40  ;;  %v2343_v43 = vpop.f32.mrb[3].mxu0 }
 0x40b   : > { %v3921_v44 = vpack.c.bf16 %v1065_v42, %v1065_v42  ;;  %1076 = vrot.lane.b32.xlu0 %v3919_v41, %s3215_s18 }
 0x40d   : > { %1126 = vrot.lane.b32.xlu1 %v3921_v44, %s3215_s18 }
 0x47d   : > { %v1077_v45 = vpop.permute.xlu0 %1076 }
 0x47e   : > { %v1083_v46 = vsel %vm1078_vm3, %v1077_v45, 0 }
 0x47f   : > { %2345 = vmatpush3.bf16.xpose.msra.mxu0 %v1083_v46  ;;  %v1127_v47 = vpop.permute.xlu1 %1126 }
 0x480   : > { %2350 = vmatprep.subr.bf16.mxu0 %v3213_v17  ;;  %v1132_v48 = vsel %vm1078_vm3, %v1127_v47, 0 }
 0x486   : > { %2347 = vmatmul.mubr.msk.bf16.vlgmr.msra.gmra.mrb[4].mxu0 %vm1078_vm3, %v3919_v41 }
 0x487   : > { %2351 = vmatpush3.bf16.xpose.msra.mxu0 %v1132_v48  ;;  %2352 = vmatprep.mubr.msk.bf16.mxu0 %vm3214_vm2, %v3213_v17 }
 0x488   : > { %2362 = vmatprep.subr.bf16.mxu0 %v3213_v17 }
 0x48e   : > { %2353 = vmatmul.mubr.msk.bf16.vlgmr.msra.gmra.mrb[8].mxu0 %vm1078_vm3, %v3921_v44 }
 0x48f   : > { %2364 = vmatprep.mubr.msk.bf16.mxu0 %vm3214_vm2, %v3213_v17 }
 0x559   : > { %v1119_v52 = vpop.f32.mrb[4].mxu0 }
 0x55a   : > { %v1176_v53 = vsel %vm1072_vm4, %v1119_v52, -1e+09  ;;  %v2348_v54 = vpop.f32.mrb[5].mxu0 }
 0x55b   : > { %v1122_v55 = vpop.f32.mrb[6].mxu0  ;;  %v1179_v56 = vsel %vm1178_vm5, %v1176_v53, -inf }
 0x55c   : > { %1180 = vmax.xlane.f32.xlu1 %v1179_v56  ;;  %v2349_v57 = vpop.f32.mrb[7].mxu0 }
 0x561   : > { %v1168_v58 = vpop.f32.mrb[8].mxu0 }
 0x562   : > { %v1177_v59 = vsel %vm1072_vm4, %v1168_v58, -1e+09  ;;  %v2354_v60 = vpop.f32.mrb[9].mxu0 }
 0x563   : > { %v1171_v61 = vpop.f32.mrb[10].mxu0  ;;  %v1182_v62 = vsel %vm1178_vm5, %v1177_v59, -inf }
 0x564   : > { %1183 = vmax.xlane.f32.xlu0 %v1182_v62  ;;  %v2355_v63 = vpop.f32.mrb[11].mxu0 }
 0x56d   : > { %1252 = vrot.lane.b32.xlu1 %v3921_v44, %s3216_s27 }
 0x571   : > { %1302 = vrot.lane.b32.xlu1 %v3919_v41, %s3217_s3 }
 0x5e9   : > { %v1181_v0 = vpop.xlane.xlu1 %1180 }
 0x5ea   : > { %v1185_v1 = vsub.f32 %v1176_v53, %v1181_v0 }
 0x5ec   : > { %v1187_v4 = vmul.f32 1.442695, %v1185_v1 }
 0x5ed   : > { %v1253_v5 = vpop.permute.xlu1 %1252 }
 0x5ee   : > { %2612 = vpow2.f32 %v1187_v4  ;;  %v1258_v6 = vsel %vm1208_vm6, %v1253_v5, 0 }
 0x5ef   : > { %2363 = vmatpush3.bf16.msra.mxu0 %v1258_v6 }
 0x5f0   : > { %2374 = vmatprep.subr.bf16.mxu0 %v3213_v17 }
 0x5f1   : > { %v1184_v7 = vpop.xlane.xlu0 %1183  ;;  %v1303_v15 = vpop.permute.xlu1 %1302 }
 0x5f2   : > { %v1186_v8 = vsub.f32 %v1177_v59, %v1184_v7  ;;  %v1308_v23 = vsel %vm1078_vm3, %v1303_v15, 0 }
 0x5f4   : > { %v1189_v9 = vmul.f32 1.442695, %v1186_v8 }
 0x5f6   : > { %2614 = vpow2.f32 %v1189_v9 }
 0x5f8   : > { %v2613_v10 = vpop.eup %2612 }
 0x5f9   : > { %v1191_v11 = vsel %vm1178_vm5, %v2613_v10, 0.0 }
 0x5fa   : > { %1192 = vadd.xlane.f32.xlu0 %v1191_v11  ;;  %v2596_v11 = vld [vmem:[%s785_s19] sm:$0xff]  }
 0x600   : > { %v2615_v12 = vpop.eup %2614 }
 0x601   : > { %v1194_v13 = vsel %vm1178_vm5, %v2615_v12, 0.0 }
 0x602   : > { %1195 = vadd.xlane.f32.xlu1 %v1194_v13 }
 0x610   : > { %1203 = vrot.lane.b32.xlu0 %v3919_v41, %s3216_s27 }
 0x613   : > { %1352 = vrot.lane.b32.xlu1 %v3921_v44, %s3217_s3 }
 0x614   : > { %1300 = vrot.lane.b32.xlu0 %v3919_v41, %s3218_s12 }
 0x617   : > { %1350 = vrot.lane.b32.xlu1 %v3921_v44, %s3218_s12 }
 0x687   : > { %v1193_v14 = vpop.xlane.xlu0 %1192 }
 0x688   : > { %2616 = vrcp.f32 %v1193_v14 }
 0x68b   : > { %v1204_v16 = vpop.permute.xlu0 %1203 }
 0x68c   : > { %v1210_v18 = vsel %vm1208_vm6, %v1204_v16, 0 }
 0x68d   : > { %2357 = vmatpush3.bf16.msra.mxu1 %v1210_v18 }
 0x68e   : > { %2368 = vmatprep.subr.bf16.mxu1 %v3213_v17 }
 0x68f   : > { %v1196_v19 = vpop.xlane.xlu1 %1195  ;;  %v1301_v28 = vpop.permute.xlu0 %1300 }
 0x690   : > { %2618 = vrcp.f32 %v1196_v19 }
 0x692   : > { %v2617_v20 = vpop.eup %2616 }
 0x693   : > { %v1199_v21 = vmul.f32 %v2617_v20, %v2613_v10  ;;  %v1353_v26 = vpop.permute.xlu1 %1352 }
 0x694   : > { %v1358_v29 = vsel %vm1078_vm3, %v1353_v26, 0 }
 0x695   : > { %v1201_v22 = vpack.c.bf16 %v1199_v21, %v1199_v21 }
 0x697   : > { %2359 = vmatmul.mubr.msk.bf16.vlgmr.msra.gmra.mrb[0].mxu1 %vm1178_vm5, %v1201_v22  ;;  %v1351_v30 = vpop.permute.xlu1 %1350 }
 0x698   : > { %2369 = vmatpush3.bf16.xpose.msra.mxu1 %v1308_v23  ;;  %2370 = vmatprep.mubr.msk.bf16.mxu1 %vm3214_vm2, %v3213_v17 }
 0x699   : > { %2380 = vmatprep.subr.bf16.mxu1 %v3213_v17 }
 0x69a   : > { %v2619_v24 = vpop.eup %2618 }
 0x69b   : > { %v1200_v25 = vmul.f32 %v2619_v24, %v2615_v12  ;;  %v2597_v12 = vld [vmem:[%s785_s19 + $0x8] sm:$0xff]  }
 0x69d   : > { %v1202_v27 = vpack.c.bf16 %v1200_v25, %v1200_v25 }
 0x69f   : > { %2365 = vmatmul.mubr.msk.bf16.vlgmr.msra.gmra.mrb[12].mxu0 %vm1178_vm5, %v1202_v27  ;;  %2371 = vmatmul.mubr.msk.bf16.vlgmr.msra.gmra.mrb[4].mxu1 %vm1078_vm3, %v1301_v28 }
 0x6a0   : > { %2375 = vmatpush3.bf16.xpose.msra.mxu0 %v1358_v29  ;;  %2376 = vmatprep.mubr.msk.bf16.mxu0 %vm3214_vm2, %v3213_v17 }
 0x6a1   : > { %2386 = vmatprep.subr.bf16.mxu0 %v3213_v17  ;;  %2382 = vmatprep.mubr.msk.bf16.mxu1 %vm3214_vm2, %v3213_v17 }
 0x6a7   : > { %2377 = vmatmul.mubr.msk.bf16.vlgmr.msra.gmra.mrb[16].mxu0 %vm1078_vm3, %v1351_v30  ;;  %v2271_v30 = vld [vmem:[%s793_s16] ss:$0 sm:$0xff] }
 0x6a8   : > { %2388 = vmatprep.mubr.msk.bf16.mxu0 %vm3214_vm2, %v3213_v17 }
 0x76a   : > { %v3981_v31 = vpop.f32.mrb[0].mxu1 }
 0x76b   : > { %v2360_v32 = vpop.f32.mrb[1].mxu1 }
 0x76c   : > { %v1249_v33 = vpop.f32.mrb[2].mxu1 }
 0x76d   : > { %v2361_v34 = vpop.f32.mrb[3].mxu1 }
 0x772   : > { %v3983_v35 = vpop.f32.mrb[12].mxu0  ;;  %v1344_v36 = vpop.f32.mrb[4].mxu1 }
 0x773   : > { %v1400_v37 = vsel %vm1072_vm4, %v1344_v36, -1e+09  ;;  %v2366_v38 = vpop.f32.mrb[13].mxu0  ;;  %v2372_v39 = vpop.f32.mrb[5].mxu1 }
 0x774   : > { %v1297_v40 = vpop.f32.mrb[14].mxu0  ;;  %v1347_v42 = vpop.f32.mrb[6].mxu1  ;;  %v1402_v43 = vsel %vm1178_vm5, %v1400_v37, -inf }
 0x775   : > { %1403 = vmax.xlane.f32.xlu0 %v1402_v43  ;;  %v2367_v45 = vpop.f32.mrb[15].mxu0  ;;  %v2373_v46 = vpop.f32.mrb[7].mxu1 }
 0x77a   : > { %v1394_v47 = vpop.f32.mrb[16].mxu0 }
 0x77b   : > { %v1401_v48 = vsel %vm1072_vm4, %v1394_v47, -1e+09  ;;  %v2378_v49 = vpop.f32.mrb[17].mxu0 }
 0x77c   : > { %v1397_v52 = vpop.f32.mrb[18].mxu0  ;;  %v1405_v53 = vsel %vm1178_vm5, %v1401_v48, -inf }
 0x77d   : > { %1406 = vmax.xlane.f32.xlu1 %v1405_v53  ;;  %v2379_v54 = vpop.f32.mrb[19].mxu0  ;;  %v2598_v52 = vld [vmem:[%s818_s17] sm:$0xff]   ;;  %v2599_v53 = vld [vmem:[%s818_s17 + $0x8] sm:$0xff]  }
 0x77e   : > { %v2600_v54 = vld [vmem:[%s3874_s21] sm:$0xff]  }
 0x78e   : > { %1474 = vrot.lane.b32.xlu1 %v3921_v44, %s3219_s24 }
 0x802   : > { %v1404_v55 = vpop.xlane.xlu0 %1403 }
 0x803   : > { %v1408_v56 = vsub.f32 %v1400_v37, %v1404_v55  ;;  %v2601_v55 = vld [vmem:[%s3874_s21 + $0x8] sm:$0xff]  }
 0x805   : > { %v1410_v57 = vmul.f32 1.442695, %v1408_v56 }
 0x807   : > { %2620 = vpow2.f32 %v1410_v57 }
 0x80a   : > { %v1407_v58 = vpop.xlane.xlu1 %1406 }
 0x80b   : > { %v1409_v59 = vsub.f32 %v1401_v48, %v1407_v58 }
 0x80d   : > { %v1412_v60 = vmul.f32 1.442695, %v1409_v59 }
 0x80e   : > { %v1475_v61 = vpop.permute.xlu1 %1474 }
 0x80f   : > { %2622 = vpow2.f32 %v1412_v60  ;;  %v1480_v50 = vsel %vm1208_vm6, %v1475_v61, 0 }
 0x810   : > { %2387 = vmatpush3.bf16.msra.mxu0 %v1480_v50 }
 0x811   : > { %v2621_v51 = vpop.eup %2620  ;;  %2400 = vmatprep.subr.bf16.mxu0 %v3213_v17 }
 0x812   : > { %v1414_v62 = vsel %vm1178_vm5, %v2621_v51, 0.0 }
 0x813   : > { %1415 = vadd.xlane.f32.xlu0 %v1414_v62  ;;  %v2272_v62 = vld [vmem:[%s801_s20] ss:$0 sm:$0xff] }
 0x819   : > { %v2623_v63 = vpop.eup %2622 }
 0x81a   : > { %v1417_v44 = vsel %vm1178_vm5, %v2623_v63, 0.0 }
 0x81b   : > { %1418 = vadd.xlane.f32.xlu0 %v1417_v44 }
 0x831   : > { %1426 = vrot.lane.b32.xlu0 %v3919_v41, %s3219_s24 }
 0x8a0   : > { %v1416_v0 = vpop.xlane.xlu0 %1415 }
 0x8a1   : > { %2624 = vrcp.f32 %v1416_v0 }
 0x8a8   : > { %v1419_v1 = vpop.xlane.xlu0 %1418 }
 0x8a9   : > { %2626 = vrcp.f32 %v1419_v1  ;;  %v2273_v1 = vld [vmem:[%s809_s23] ss:$0 sm:$0xff] }
 0x8ab   : > { %v2625_v4 = vpop.eup %2624 }
 0x8ac   : > { %v1422_v5 = vmul.f32 %v2625_v4, %v2621_v51  ;;  %v1427_v6 = vpop.permute.xlu0 %1426 }
 0x8ad   : > { %v1432_v7 = vsel %vm1208_vm6, %v1427_v6, 0 }
 0x8ae   : > { %2381 = vmatpush3.bf16.msra.mxu1 %v1432_v7  ;;  %v1424_v8 = vpack.c.bf16 %v1422_v5, %v1422_v5 }
 0x8af   : > { %2392 = vmatprep.subr.bf16.mxu1 %v3213_v17 }
 0x8b1   : > { %2383 = vmatmul.mubr.msk.bf16.vlgmr.msra.gmra.mrb[8].mxu1 %vm1178_vm5, %v1424_v8  ;;  %v2602_v8 = vld [vmem:[%s3874_s21 + $0x10] sm:$0xff]  }
 0x8b2   : > { %2396 = vmatprep.mubr.msk.bf16.mxu1 %vm3214_vm2, %v3213_v17  ;;  %2393 = vmatpush3.bf16.msra.mxu1 %v2596_v11  ;;  %v2606_v11 = vld [vmem:[%s3874_s21 + $0x30] sm:$0xff]  }
 0x8b3   : > { %v2627_v41 = vpop.eup %2626  ;;  %2394 = vmatprep.subr.bf16.mxu1 %v3213_v17 }
 0x8b4   : > { %v1423_v9 = vmul.f32 %v2627_v41, %v2623_v63  ;;  %v2603_v41 = vld [vmem:[%s3874_s21 + $0x18] sm:$0xff]  }
 0x8b6   : > { %v1425_v10 = vpack.c.bf16 %v1423_v9, %v1423_v9  ;;  %2395 = vmatpush3.bf16.msra.mxu1 %v2597_v12  ;;  %v2604_v9 = vld [vmem:[%s3874_s21 + $0x20] sm:$0xff]   ;;  %v2607_v12 = vld [vmem:[%s3874_s21 + $0x38] sm:$0xff]  }
 0x8b7   : > { %2408 = vmatprep.subr.bf16.mxu1 %v3213_v17 }
 0x8b8   : > { %2389 = vmatmul.mubr.msk.bf16.vlgmr.msra.gmra.mrb[20].mxu0 %vm1178_vm5, %v1425_v10  ;;  %v2605_v10 = vld [vmem:[%s3874_s21 + $0x28] sm:$0xff]  }
 0x8b9   : > { %2404 = vmatprep.mubr.msk.bf16.mxu0 %vm3214_vm2, %v3213_v17  ;;  %2401 = vmatpush3.bf16.msra.mxu0 %v2598_v52 }
 0x8ba   : > { %2402 = vmatprep.subr.bf16.mxu0 %v3213_v17 }
 0x8bd   : > { %2403 = vmatpush3.bf16.msra.mxu0 %v2599_v53 }
 0x984   : > { %v1468_v13 = vpop.f32.mrb[8].mxu1 }
 0x985   : > { %v2384_v14 = vpop.f32.mrb[9].mxu1 }
 0x986   : > { %v1471_v15 = vpop.f32.mrb[10].mxu1 }
 0x987   : > { %v2385_v16 = vpop.f32.mrb[11].mxu1 }
 0x98b   : > { %v1516_v18 = vpop.f32.mrb[20].mxu0 }
 0x98c   : > { %v2589_v19 = vpack.i.bf16 %v1516_v18, %v1468_v13  ;;  %v2390_v20 = vpop.f32.mrb[21].mxu0  ;;  %v2274_v13 = vld [vmem:[%s826_s10] ss:$0 sm:$0xff] }
 0x98d   : > { %v1519_v21 = vpop.f32.mrb[22].mxu0 }
 0x98e   : > { %2590 = vrot.lane.b32.xlu1 %v2589_v19, %s3220_s8  ;;  %v2391_v22 = vpop.f32.mrb[23].mxu0 }
 0xa00   : > { %v2591_v23 = vpop.permute.xlu1 %2590 }
 0xa01   : > { %v2593_v24 = vunpack.i.h.bf16 %v2591_v23  ;;  %v2592_v25 = vunpack.i.l.bf16 %v2591_v23 }
 0xa03   : > { %v1531_v26 = vsel %vm1078_vm3, %v3983_v35, %v2593_v24  ;;  %v1530_v27 = vsel %vm1078_vm3, %v3981_v31, %v2592_v25 }
 0xa04   : > { %v1532_v28 = vpack.c.bf16 %v1531_v26, %v1530_v27 }
 0xa06   : > { %2397 = vmatmul.mubr.msk.bf16.vlgmr.msra.gmra.mrb[12].mxu1 %vm956_vm1, %v1532_v28 }
 0xa07   : > { %2424 = vmatprep.mubr.msk.bf16.mxu1 %vm3214_vm2, %v3213_v17  ;;  %2409 = vmatpush3.bf16.msra.mxu1 %v2600_v54 }
 0xa08   : > { %2410 = vmatprep.subr.bf16.mxu1 %v3213_v17 }
 0xa0b   : > { %2411 = vmatpush3.bf16.msra.mxu1 %v2601_v55 }
 0xa0c   : > { %2412 = vmatprep.subr.bf16.mxu1 %v3213_v17 }
 0xa0f   : > { %2413 = vmatpush3.bf16.msra.mxu1 %v2602_v8 }
 0xa10   : > { %2414 = vmatprep.subr.bf16.mxu1 %v3213_v17 }
 0xa13   : > { %2415 = vmatpush3.bf16.msra.mxu1 %v2603_v41 }
 0xa14   : > { %2416 = vmatprep.subr.bf16.mxu1 %v3213_v17 }
 0xa17   : > { %2417 = vmatpush3.bf16.msra.mxu1 %v2604_v9 }
 0xa18   : > { %2418 = vmatprep.subr.bf16.mxu1 %v3213_v17 }
 0xa1b   : > { %2419 = vmatpush3.bf16.msra.mxu1 %v2605_v10 }
 0xa1c   : > { %2420 = vmatprep.subr.bf16.mxu1 %v3213_v17 }
 0xa1f   : > { %2421 = vmatpush3.bf16.msra.mxu1 %v2606_v11 }
 0xa20   : > { %2422 = vmatprep.subr.bf16.mxu1 %v3213_v17 }
 0xa23   : > { %2423 = vmatpush3.bf16.msra.mxu1 %v2607_v12 }
 0xad9   : > { %v1586_v29 = vpop.f32.mrb[12].mxu1 }
 0xada   : > { %v1593_v32 = vadd.f32 %v1586_v29, %v3886_v2  ;;  %v2398_v33 = vpop.f32.mrb[13].mxu1 }
 0xadb   : > { %v1589_v34 = vpop.f32.mrb[14].mxu1 }
 0xadc   : > { %v4023_v36 = vadd.f32 %v2271_v30, %v1593_v32  ;;  %v1594_v35 = vadd.f32 %v1589_v34, %v3888_v3  ;;  %v2399_v37 = vpop.f32.mrb[15].mxu1  ;;  %v2278_v32 = vld [vmem:[%s843_s15] ss:$0 sm:$0xff] }
 0xade   : > { %v4026_v38 = vadd.f32 %v2271_v30, %v1594_v35  ;;  %v1606_v31 = vsel %vm956_vm1, %v4023_v36, 0.0 }
 0xadf   : > { %1607 = vadd.xlane.f32.xlu1 %v1606_v31 }
 0xae0   : > { %v1609_v39 = vsel %vm956_vm1, %v4026_v38, 0.0 }
 0xae1   : > { %1610 = vadd.xlane.f32.xlu0 %v1609_v39 }
 0xb6c   : > { %v1608_v2 = vpop.xlane.xlu1 %1607 }
 0xb6d   : > { %v1612_v40 = vmul.f32 0.03125, %v1608_v2 }
 0xb6e   : > { %v1611_v42 = vpop.xlane.xlu0 %1610 }
 0xb6f   : > { %v1614_v43 = vsub.f32 %v4023_v36, %v1612_v40  ;;  %v1613_v3 = vmul.f32 0.03125, %v1611_v42 }
 0xb71   : > { %v1615_v45 = vsub.f32 %v4026_v38, %v1613_v3  ;;  %v1616_v46 = vmul.f32 %v1614_v43, %v1614_v43 }
 0xb73   : > { %v1618_v47 = vsel %vm956_vm1, %v1616_v46, 0.0  ;;  %v1617_v48 = vmul.f32 %v1615_v45, %v1615_v45 }
 0xb74   : > { %1619 = vadd.xlane.f32.xlu0 %v1618_v47 }
 0xb75   : > { %v1621_v49 = vsel %vm956_vm1, %v1617_v48, 0.0 }
 0xb78   : > { %1622 = vadd.xlane.f32.xlu0 %v1621_v49 }
 0xc01   : > { %v1620_v56 = vpop.xlane.xlu0 %1619 }
 0xc02   : > { %v1624_v57 = vmul.f32 0.03125, %v1620_v56 }
 0xc04   : > { %v1626_v58 = vadd.f32 1e-05, %v1624_v57 }
 0xc05   : > { %v1623_v59 = vpop.xlane.xlu0 %1622 }
 0xc06   : > { %2628 = vrsqrt.f32 %v1626_v58  ;;  %v1625_v60 = vmul.f32 0.03125, %v1623_v59 }
 0xc08   : > { %v1627_v61 = vadd.f32 1e-05, %v1625_v60 }
 0xc0a   : > { %2630 = vrsqrt.f32 %v1627_v61  ;;  %v2288_v61 = vld [vmem:[#allocation24] ss:$0 sm:$0xff] (!%p2287_p12) }
 0xc10   : > { %v2629_v50 = vpop.eup %2628 }
 0xc11   : > { %v1630_v51 = vmul.f32 %v2629_v50, %v1614_v43 }
 0xc13   : > { %v1638_v44 = vmul.f32 %v2272_v62, %v1630_v51  ;;  %v2289_v51 = vld [vmem:[#allocation26] ss:$0 sm:$0xff] (!%p2287_p12) }
 0xc14   : > { %v2631_v63 = vpop.eup %2630 }
 0xc15   : > { %v1631_v0 = vmul.f32 %v2631_v63, %v1615_v45  ;;  %v1646_v5 = vadd.f32 %v2273_v1, %v1638_v44 }
 0xc17   : > { %v1639_v4 = vmul.f32 %v2272_v62, %v1631_v0 }
 0xc19   : > { %v1647_v6 = vadd.f32 %v2273_v1, %v1639_v4 }
 0xc1b   : > { %v1648_v7 = vpack.c.bf16 %v1647_v6, %v1646_v5 }
 0xc1d   : > { %2405 = vmatmul.mubr.msk.bf16.vlgmr.msra.gmra.mrb[24].mxu0 %vm956_vm1, %v1648_v7 }
 0xcf0   : > { %v1709_v14 = vpop.f32.mrb[24].mxu0 }
 0xcf1   : > { %v1710_v15 = vadd.f32 %v2274_v13, %v1709_v14  ;;  %v2406_v16 = vpop.f32.mrb[25].mxu0 }
 0xcf2   : > { %v1712_v18 = vpop.f32.mrb[26].mxu0 }
 0xcf3   : > { %v1718_v19 = vmul.f32 0.70710677, %v1710_v15  ;;  %v1713_v20 = vadd.f32 %v2274_v13, %v1712_v18  ;;  %v2407_v21 = vpop.f32.mrb[27].mxu0  ;;  %v1716_v26 = vmul.f32 0.5, %v1710_v15 }
 0xcf5   : > { %2632 = verf.f32 %v1718_v19  ;;  %v1719_v22 = vmul.f32 0.70710677, %v1713_v20  ;;  %v1717_v17 = vmul.f32 0.5, %v1713_v20 }
 0xcf7   : > { %2634 = verf.f32 %v1719_v22 }
 0xcff   : > { %v2633_v23 = vpop.eup %2632 }
 0xd00   : > { %v1722_v24 = vadd.f32 1.0, %v2633_v23 }
 0xd01   : > { %v2635_v25 = vpop.eup %2634 }
 0xd02   : > { %v1723_v27 = vadd.f32 1.0, %v2635_v25  ;;  %v1724_v28 = vmul.f32 %v1722_v24, %v1716_v26 }
 0xd04   : > { %v1725_v29 = vmul.f32 %v1723_v27, %v1717_v17 }
 0xd06   : > { %v1726_v30 = vpack.c.bf16 %v1725_v29, %v1724_v28 }
 0xd08   : > { %2425 = vmatmul.mubr.bf16.vlgmr.msra.gmra.mrb[16].mxu1 %v1726_v30 }
 0xddb   : > { %v1832_v33 = vpop.f32.mrb[16].mxu1 }
 0xddc   : > { %v1833_v34 = vadd.f32 %v2278_v32, %v1832_v33  ;;  %v2426_v35 = vpop.f32.mrb[17].mxu1  ;;  %1846 = sbr.rel (%p2287_p12) target bundleno = 3872 (0xf20), region = 148 }
 0xddd   : > { %v1835_v37 = vpop.f32.mrb[18].mxu1 }
 0xdde   : > { %v1839_v31 = vadd.f32 %v1833_v34, %v4023_v36  ;;  %v1836_v39 = vadd.f32 %v2278_v32, %v1835_v37  ;;  %v2427_v2 = vpop.f32.mrb[19].mxu1 }
 0xde0   : > { %1841 = vst.msk [vmem:[#allocation2] sm:$0xff] %vm956_vm1, %v1839_v31  ;;  %v1840_v40 = vadd.f32 %v1836_v39, %v4026_v38  ;;  %v1849_v42 = vsel (!%p2287_p12), %vm956_vm1, %v1839_v31, 0.0 }
 0xde1   : > { %1850 = vadd.xlane.f32.xlu0 (!%p2287_p12), %v1849_v42 }
 0xde2   : > { %1842 = vst.msk [vmem:[#allocation2 + $0x8] sm:$0xff] %vm956_vm1, %v1840_v40  ;;  %v1852_v43 = vsel (!%p2287_p12), %vm956_vm1, %v1840_v40, 0.0 }
 0xde5   : > { %1853 = vadd.xlane.f32.xlu0 %v1852_v43 }
 0xe6e   : > { %v1851_v3 = vpop.xlane.xlu0 %1850 }
 0xe6f   : > { %v1855_v45 = vmul.f32 0.03125, %v1851_v3 }
 0xe71   : > { %v1857_v36 = vsub.f32 %v1839_v31, %v1855_v45 }
 0xe72   : > { %v1854_v46 = vpop.xlane.xlu0 %1853 }
 0xe73   : > { %v1856_v47 = vmul.f32 0.03125, %v1854_v46  ;;  %v1859_v48 = vmul.f32 %v1857_v36, %v1857_v36 }
 0xe75   : > { %v1858_v49 = vsub.f32 %v1840_v40, %v1856_v47  ;;  %v1861_v38 = vsel %vm956_vm1, %v1859_v48, 0.0 }
 0xe76   : > { %1862 = vadd.xlane.f32.xlu1 %v1861_v38 }
 0xe77   : > { %v1860_v52 = vmul.f32 %v1858_v49, %v1858_v49 }
 0xe79   : > { %v1864_v53 = vsel %vm956_vm1, %v1860_v52, 0.0 }
 0xe7a   : > { %1865 = vadd.xlane.f32.xlu1 %v1864_v53 }
 0xf03   : > { %v1863_v54 = vpop.xlane.xlu1 %1862 }
 0xf04   : > { %v1867_v55 = vmul.f32 0.03125, %v1863_v54 }
 0xf06   : > { %v1869_v56 = vadd.f32 1e-05, %v1867_v55 }
 0xf07   : > { %v1866_v57 = vpop.xlane.xlu1 %1865 }
 0xf08   : > { %2636 = vrsqrt.f32 %v1869_v56  ;;  %v1868_v58 = vmul.f32 0.03125, %v1866_v57 }
 0xf0a   : > { %v1870_v59 = vadd.f32 1e-05, %v1868_v58 }
 0xf0c   : > { %2638 = vrsqrt.f32 %v1870_v59 }
 0xf12   : > { %v2637_v60 = vpop.eup %2636 }
 0xf13   : > { %v1873_v50 = vmul.f32 %v2637_v60, %v1857_v36 }
 0xf15   : > { %v1881_v62 = vmul.f32 %v2288_v61, %v1873_v50 }
 0xf16   : > { %v2639_v63 = vpop.eup %2638 }
 0xf17   : > { %v1889_v44 = vadd.f32 %v2289_v51, %v1881_v62  ;;  %v1874_v0 = vmul.f32 %v2639_v63, %v1858_v49 }
 0xf19   : > { %v2300_v1 = vpack.c.bf16 %v1889_v44, %v1889_v44  ;;  %v1882_v4 = vmul.f32 %v2288_v61, %v1874_v0 }
 0xf1b   : > { %1900 = vst.msk [vmem:[#allocation27] sm:$0xf] %vm1899_vm7, %v2300_v1  ;;  %v1890_v5 = vadd.f32 %v2289_v51, %v1882_v4 }
 0xf1d   : > { %v2301_v6 = vpack.c.bf16 %v1890_v5, %v1890_v5 }
 0xf1f   : > { %1901 = vst.msk [vmem:[#allocation27 + $0x4] sm:$0xf] %vm1899_vm7, %v2301_v6 }
 0xf20 PF: > { %s4232_s26 = sld [smem:[#allocation41_spill]]  ;;  %s3221_s1 = smov [#allocation27]  }
 0xf21   : > { %s1911_s19 = sshll.u32 %s3221_s1, 4  ;;  %s1912_s19 = int_to_ptr.vmem [resolvable:$true] %s1911_s19 }
 0xf22   : > { %s3084_s16 = scalar_lea.vmem %s1912_s19, 128  ;;  %p3091_p6 = scmp.lt.s32.totalorder %s1912_s19, %s1912_s19 }
 0xf23   : > { %p3085_p3 = scmp.ne.s32.totalorder %s1912_s19, %s3084_s16  ;;  %p3092_p10 = scmp.lt.s32.totalorder %s3084_s16, %s3084_s16 }
 0xf25   : > { %p3093_p2 = por %p3092_p10, %p3091_p6 }
 0xf26   : > { %p2522_p5 = scmp.eq.s32.totalorder %s4232_s26, 1 }
 0xf28   : > { %p3086_p11 = pnand %p3085_p3, %p2522_p5 }
 0xf2a   : > { %p3087_p8 = pneg %p3086_p11 }
 0xf2c   : > { %p3094_p13 = pnand %p3093_p2, %p3087_p8 }
 0xf2e   : > { %3097 = shalt.err (!%p3094_p13)
}
 0xf2f   : > { %s4233_s7 = sld [smem:[#allocation55_spill]] }
 0xf35   : > { %s3098_s17 = scalar_lea.hbm %s4233_s7, 128 }
 0xf36   : > { %p3099_p1 = scmp.ne.s32.totalorder %s4233_s7, %s3098_s17  ;;  %p3104_p9 = scmp.lt.u32.totalorder %s3098_s17, %s4233_s7 }
 0xf38   : > { %p3100_p4 = pnand %p3099_p1, %p2522_p5 }
 0xf3a   : > { %p3101_p7 = pneg %p3100_p4 }
 0xf3c   : > { %p3106_p0 = pnand %p3104_p9, %p3101_p7 }
 0xf3e   : > { %3109 = shalt.err (!%p3106_p0)
}
 0xf3f   : > { %s3222_s15 = smov 4  }
 0xf40   : > { %2465 = dma.vmem_to_hbm [thread:$0]  (%p2522_p5), %s1912_s19, 128, %s4233_s7, [#allocation5], %s3216_s27, %s3216_s27, %s3222_s15  }
 0xf41   : > { %3167 = dma.done.wait (%p2522_p5), [#allocation5], 128  }
 0xf42   : > { %3169 = vsyncadd (%p2522_p5), [#allocation5], 4294967168 }
 0xf43 PF: > { %s4234_s3 = sld [smem:[#allocation40_spill]]  ;;  %s4235_s18 = sld [smem:[#allocation37_spill]] }
 0xf44   : > { %s4236_s19 = sld [smem:[#allocation38_spill]]  ;;  %s4237_s20 = sld [smem:[#allocation44_spill]] }
 0xf45   : > { %s4238_s12 = sld [smem:[#allocation42_spill]]  ;;  %s4239_s21 = smov %s3188_s22 }
 0xf49   : > { %s46_s23 = sadd.s32 1, %s4234_s3  }
 0xf4a   : > { %p43_p12 = scmp.ge.s32.totalorder %s46_s23, 4  }
 0xf4b   : > { %s4240_s22 = smov %s4238_s12 }
 0xf4c   :  { %45 = sbr.rel (!%p43_p12) target bundleno = 28 (0x1c), region = 271 }
 0xf53   :  { %1927 = vsyncpa [#allocation4], 1 }
 0xf54   :  { %1929 = vsyncpa [#allocation4 + $0x1], 1 }
 0xf55   :  { %1930 = vsyncpa [#allocation7], 1 }
 0xf56   :  { %1932 = vsyncpa [#allocation7 + $0x1], 1 }
 0xf57   :  { %1933 = vsyncpa [#allocation10], 1 }
 0xf58   :  { %1935 = vsyncpa [#allocation10 + $0x1], 1 }
 0xf59   :  { %1936 = vsyncpa [#allocation13], 1 }
 0xf5a   :  { %1938 = vsyncpa [#allocation13 + $0x1], 1 }
 0xf5b   :  { %1939 = vsyncpa [#allocation16], 1 }
 0xf5c   :  { %1941 = vsyncpa [#allocation16 + $0x1], 1 }
 0xf5d   :  { %1942 = vsyncpa [#allocation19], 1 }
 0xf5e   :  { %1944 = vsyncpa [#allocation19 + $0x1], 1 }
 0xf5f   :  { %1945 = vsyncpa [#allocation22], 1 }
 0xf60   :  { %1947 = vsyncpa [#allocation22 + $0x1], 1 }
 0xf61   :  { %1948 = vsyncpa [#allocation25], 1 }
 0xf62   :  { %1949 = vsyncpa [#allocation5], 1 }
 0xf63   :  { %1951 = vsyncpa [#allocation5 + $0x1], 1 }

</bundles_post_ra>
